<compile_context>
chip_gen: v7x
topology: tpu7x:2x2x1
jax: 0.10.0
libtpu: 0.0.40
codegen_flags: <defaults>
</compile_context>

<pallas_src>
import jax
import jax.numpy as jnp
import numpy as np
from jax.experimental import pallas as pl
from jax.experimental.pallas import tpu as pltpu

INPUT_SIZE = 1
HIDDEN_SIZE = 50
NUM_LAYERS = 2
OUTPUT_SIZE = 1

# Torch gate block order (i, f, g, o) -> kernel order (i, f, o, g).
_GATE_PERM = np.array([0, 1, 3, 2], dtype=np.int32)


# ---------------------------------------------------------------------------
# Kernel
# ---------------------------------------------------------------------------
def lstm_forecast_kernel(x_ref,      # (T, B, 1)     f32 : time-major input
                         w_ref,      # (3, Hp, 4Hp)  bf16: [Whh0, Wih1, Whh1]
                         misc_ref,   # (4, 4Hp)      f32 : [wih0_row, b0, b1, fcb(pad)]
                         fcw_ref,    # (Hp, O)       f32
                         out_ref):   # (B, O)        f32
    T, B, _ = x_ref.shape
    G = misc_ref.shape[1]
    Hp = G // 4
    H3 = 3 * Hp
    O = out_ref.shape[1]

    # Loop-invariant rows: broadcast ONCE (outside the unrolled loop, so no
    # per-iteration broadcast_in_dim re-emission).
    wih0_b = jnp.broadcast_to(misc_ref[0:1, :], (B, G))   # layer-0 input-proj row
    b0_b = jnp.broadcast_to(misc_ref[1:2, :], (B, G))     # b_ih0 + b_hh0
    b1_b = jnp.broadcast_to(misc_ref[2:3, :], (B, G))     # b_ih1 + b_hh1

    def gates_to_hc(g, c_prev):
        # Gate layout (i | f | o | cand): one sigmoid over the first 3Hp lanes,
        # one tanh over the last Hp (fewer EUP issues than 4 separate slices).
        sg = jax.nn.sigmoid(g[:, :H3])
        cand = jnp.tanh(g[:, H3:])
        i = sg[:, 0 * Hp:1 * Hp]
        f = sg[:, 1 * Hp:2 * Hp]
        o = sg[:, 2 * Hp:3 * Hp]
        c_new = f * c_prev + i * cand
        h_new = o * jnp.tanh(c_new)
        return h_new, c_new

    def body(t, carry):
        h0, c0, h1, c1 = carry                               # each (B, Hp) f32

        # Layer-1 recurrent term depends only on step t-1 state: issue it
        # first so its MXU latency hides under layer-0's gate nonlinearities.
        # (weights re-read from VMEM in-loop to keep vreg pressure low)
        rec1 = jnp.dot(h1.astype(jnp.bfloat16), w_ref[2],
                       preferred_element_type=jnp.float32)

        # Layer 0: I = 1, so the input projection is a per-step VPU FMA on an
        # otherwise idle VALU slot (no xproj tensor, no extra MXU work).
        x_t = x_ref[t]                                       # (B, 1)
        g0 = (x_t * wih0_b + b0_b
              + jnp.dot(h0.astype(jnp.bfloat16), w_ref[0],
                        preferred_element_type=jnp.float32))
        h0n, c0n = gates_to_hc(g0, c0)

        # Layer 1.
        g1 = (jnp.dot(h0n.astype(jnp.bfloat16), w_ref[1],
                      preferred_element_type=jnp.float32)
              + rec1 + b1_b)
        h1n, c1n = gates_to_hc(g1, c1)
        return h0n, c0n, h1n, c1n

    # TODO(synk): for long sequences switch unroll=True to a partial unroll
    # (unroll=4 or 8) to bound code size / vreg pressure.
    zeros = jnp.zeros((B, Hp), jnp.float32)
    _, _, h1_last, _ = jax.lax.fori_loop(
        0, T, body, (zeros, zeros, zeros, zeros), unroll=True)

    # Final head on the last-timestep hidden of the top layer (one-time,
    # off-loop). fc bias lives in misc row 3 (lanes [0, O)).
    out_ref[...] = (jnp.dot(h1_last, fcw_ref[...],
                            preferred_element_type=jnp.float32)
                    + misc_ref[3:4, :O])


# ---------------------------------------------------------------------------
# One-time parameter preparation (hoisted out of the per-call graph)
# ---------------------------------------------------------------------------
def _round_up(n, m):
    return ((n + m - 1) // m) * m


def _gate_cols(a, H, Hp):
    """(..., 4H) in torch gate order (i,f,g,o) -> (..., 4Hp) in kernel order
    (i,f,o,g), each gate block zero-padded from H to Hp lanes."""
    lead = a.shape[:-1]
    a = a.reshape(lead + (4, H))
    a = jnp.take(a, _GATE_PERM, axis=-2)
    pad = [(0, 0)] * (len(lead) + 1) + [(0, Hp - H)]
    return jnp.pad(a, pad).reshape(lead + (4 * Hp,))


def prepare_params(params, hidden_size=HIDDEN_SIZE, output_size=OUTPUT_SIZE):
    """Preprocess torch-layout params once; the per-call graph then consists
    of just the pallas_call (plus a tiny x transpose)."""
    H, O = hidden_size, output_size
    Hp = _round_up(H, 64)     # gate slices on 64-lane boundaries; padding exact
    G = 4 * Hp
    f32 = jnp.float32

    def hidden_weight(w):     # torch (4H, H) -> padded (Hp, 4Hp) bf16 MXU operand
        wT = _gate_cols(jnp.transpose(w).astype(f32), H, Hp)      # (H, 4Hp)
        wT = jnp.pad(wT, ((0, Hp - H), (0, 0)))                   # (Hp, 4Hp)
        return wT.astype(jnp.bfloat16)

    w_stack = jnp.stack([hidden_weight(params["w_hh0"]),
                         hidden_weight(params["w_ih1"]),
                         hidden_weight(params["w_hh1"])])          # (3, Hp, 4Hp)

    # Layer-0 input-projection row (I = 1) and combined biases.
    wih0_row = _gate_cols(jnp.transpose(params["w_ih0"]).astype(f32), H, Hp)[0]
    b0 = _gate_cols((params["b_ih0"] + params["b_hh0"]).astype(f32), H, Hp)
    b1 = _gate_cols((params["b_ih1"] + params["b_hh1"]).astype(f32), H, Hp)
    fcb = jnp.pad(params["fc_b"].astype(f32), (0, G - O))
    misc = jnp.stack([wih0_row, b0, b1, fcb])                      # (4, 4Hp) f32

    fcw = jnp.pad(jnp.transpose(params["fc_w"]).astype(f32),
                  ((0, Hp - H), (0, 0)))                           # (Hp, O)

    return {"w_stack": w_stack, "misc": misc, "fcw": fcw}


# ---------------------------------------------------------------------------
# Wrapper
# ---------------------------------------------------------------------------
def lstm_forecast(x, prepped):
    """x: (B, T, I) batch_first (I must be 1), prepped: prepare_params(...)."""
    B, T, I = x.shape
    assert I == 1, "kernel specializes the I=1 input projection to a VPU FMA"
    # TODO(synk): for I > 1, pass a (Hp_in, 4Hp) wih0 and use an in-kernel dot.
    O = prepped["fcw"].shape[1]

    x_tb = jnp.transpose(x, (1, 0, 2)).astype(jnp.float32)         # (T, B, 1)

    vmem = pl.BlockSpec(memory_space=pltpu.MemorySpace.VMEM)
    out = pl.pallas_call(
        lstm_forecast_kernel,
        out_shape=jax.ShapeDtypeStruct((B, O), jnp.float32),
        in_specs=[vmem, vmem, vmem, vmem],
        out_specs=vmem,
    )(x_tb, prepped["w_stack"], prepped["misc"], prepped["fcw"])
    # TODO(synk): for many independent sequences on v7x, add a leading batch
    # grid axis with dimension_semantics=("parallel",) so both TensorCores
    # split the batch; at B=2 a single grid-less invocation is right.

    return jnp.squeeze(out)


# ---------------------------------------------------------------------------
# Params / reference
# ---------------------------------------------------------------------------
def init_params(key, input_size=INPUT_SIZE, hidden_size=HIDDEN_SIZE,
                output_size=OUTPUT_SIZE):
    """Deterministic params with PyTorch-style uniform(-1/sqrt(H), 1/sqrt(H))."""
    k = 1.0 / np.sqrt(hidden_size)
    keys = jax.random.split(key, 10)
    u = lambda kk, shape: jax.random.uniform(kk, shape, jnp.float32, -k, k)
    return {
        # layer 0
        "w_ih0": u(keys[0], (4 * hidden_size, input_size)),
        "w_hh0": u(keys[1], (4 * hidden_size, hidden_size)),
        "b_ih0": u(keys[2], (4 * hidden_size,)),
        "b_hh0": u(keys[3], (4 * hidden_size,)),
        # layer 1
        "w_ih1": u(keys[4], (4 * hidden_size, hidden_size)),
        "w_hh1": u(keys[5], (4 * hidden_size, hidden_size)),
        "b_ih1": u(keys[6], (4 * hidden_size,)),
        "b_hh1": u(keys[7], (4 * hidden_size,)),
        # fc
        "fc_w": u(keys[8], (output_size, hidden_size)),
        "fc_b": u(keys[9], (output_size,)),
    }


def lstm_forecast_reference(x, params):
    """Pure-JAX f32 reference (lax.scan) mirroring torch.nn.LSTM semantics."""
    B, T, I = x.shape
    H = HIDDEN_SIZE

    def cell(x_t, h, c, w_ih, w_hh, b_ih, b_hh):
        gates = x_t @ w_ih.T + h @ w_hh.T + b_ih + b_hh
        i = jax.nn.sigmoid(gates[:, 0 * H:1 * H])
        f = jax.nn.sigmoid(gates[:, 1 * H:2 * H])
        g = jnp.tanh(gates[:, 2 * H:3 * H])
        o = jax.nn.sigmoid(gates[:, 3 * H:4 * H])
        c_new = f * c + i * g
        h_new = o * jnp.tanh(c_new)
        return h_new, c_new

    def step(carry, x_t):
        h0, c0, h1, c1 = carry
        h0, c0 = cell(x_t, h0, c0, params["w_ih0"], params["w_hh0"],
                      params["b_ih0"], params["b_hh0"])
        h1, c1 = cell(h0, h1, c1, params["w_ih1"], params["w_hh1"],
                      params["b_ih1"], params["b_hh1"])
        return (h0, c0, h1, c1), None

    zeros = jnp.zeros((B, H), jnp.float32)
    (h0, c0, h1, c1), _ = jax.lax.scan(
        step, (zeros, zeros, zeros, zeros), jnp.transpose(x, (1, 0, 2)))
    out = h1 @ params["fc_w"].T + params["fc_b"]
    return jnp.squeeze(out)


if __name__ == "__main__":
    key = jax.random.PRNGKey(0)
    key_x, key_p = jax.random.split(key)

    B, T, I = 2, 8, INPUT_SIZE
    x = jax.random.normal(key_x, (B, T, I), dtype=jnp.float32)
    params = init_params(key_p)

    # One-time weight preprocessing (hoisted out of the per-call path).
    prepped = jax.tree_util.tree_map(jax.block_until_ready,
                                     prepare_params(params))

    out = jax.block_until_ready(lstm_forecast(x, prepped))
    ref = jax.block_until_ready(lstm_forecast_reference(x, params))

    assert out.shape == ref.shape, (out.shape, ref.shape)
    # Tolerance accounts for bf16 recurrent-matmul operands (f32 accumulation);
    # observed error is O(1e-3) at T=8, well inside 2e-2.
    np.testing.assert_allclose(np.asarray(out), np.asarray(ref),
                               rtol=2e-2, atol=2e-2)
    print("KERNEL_OK")
</pallas_src>

<mosaic_0001>
module attributes {stable_mosaic.version = 11 : i64} {
  func.func @lstm_forecast_kernel(%arg0: memref<8x2x1xf32, #tpu.memory_space<vmem>>, %arg1: memref<3x64x256xbf16, #tpu.memory_space<vmem>>, %arg2: memref<4x256xf32, #tpu.memory_space<vmem>>, %arg3: memref<64x1xf32, #tpu.memory_space<vmem>>, %arg4: memref<2x1xf32, #tpu.memory_space<vmem>>) attributes {dimension_semantics = [], scalar_prefetch = 0 : i64, scratch_operands = 0 : i64, tpu.core_type = #tpu.core_type<tc>} {
    %c0 = arith.constant 0 : index
    %c0_0 = arith.constant 0 : index
    %0 = vector.load %arg2[%c0, %c0_0] : memref<4x256xf32, #tpu.memory_space<vmem>>, vector<1x256xf32>
    %1 = vector.shape_cast %0 : vector<1x256xf32> to vector<1x256xf32>
    %2 = vector.broadcast %1 : vector<1x256xf32> to vector<2x256xf32>
    %c1 = arith.constant 1 : index
    %c0_1 = arith.constant 0 : index
    %3 = vector.load %arg2[%c1, %c0_1] : memref<4x256xf32, #tpu.memory_space<vmem>>, vector<1x256xf32>
    %4 = vector.shape_cast %3 : vector<1x256xf32> to vector<1x256xf32>
    %5 = vector.broadcast %4 : vector<1x256xf32> to vector<2x256xf32>
    %c2 = arith.constant 2 : index
    %c0_2 = arith.constant 0 : index
    %6 = vector.load %arg2[%c2, %c0_2] : memref<4x256xf32, #tpu.memory_space<vmem>>, vector<1x256xf32>
    %7 = vector.shape_cast %6 : vector<1x256xf32> to vector<1x256xf32>
    %8 = vector.broadcast %7 : vector<1x256xf32> to vector<2x256xf32>
    %cst = arith.constant 0.000000e+00 : f32
    %9 = vector.broadcast %cst : f32 to vector<2x64xf32>
    %c0_i32 = arith.constant 0 : i32
    %10 = arith.truncf %9 : vector<2x64xf32> to vector<2x64xbf16>
    %c2_3 = arith.constant 2 : index
    %c0_4 = arith.constant 0 : index
    %c0_5 = arith.constant 0 : index
    %11 = vector.load %arg1[%c2_3, %c0_4, %c0_5] : memref<3x64x256xbf16, #tpu.memory_space<vmem>>, vector<1x64x256xbf16>
    %12 = vector.shape_cast %11 : vector<1x64x256xbf16> to vector<64x256xbf16>
    %cst_6 = arith.constant dense<0.000000e+00> : vector<2x256xf32>
    %13 = tpu.matmul %10, %12, %cst_6 {dimension_numbers = #tpu.dot_dimension_numbers<[1], [0], [0], [1], [0, 0, 1, 1], [], []>} : vector<2x64xbf16>, vector<64x256xbf16>, vector<2x256xf32> -> vector<2x256xf32>
    %14 = arith.index_cast %c0_i32 : i32 to index
    %c0_7 = arith.constant 0 : index
    %c0_8 = arith.constant 0 : index
    %15 = vector.load %arg0[%14, %c0_7, %c0_8] : memref<8x2x1xf32, #tpu.memory_space<vmem>>, vector<1x2x1xf32>
    %16 = vector.shape_cast %15 : vector<1x2x1xf32> to vector<2x1xf32>
    %17 = vector.broadcast %16 : vector<2x1xf32> to vector<2x256xf32>
    %18 = arith.mulf %17, %2 : vector<2x256xf32>
    %19 = arith.addf %18, %5 : vector<2x256xf32>
    %20 = arith.truncf %9 : vector<2x64xf32> to vector<2x64xbf16>
    %c0_9 = arith.constant 0 : index
    %c0_10 = arith.constant 0 : index
    %c0_11 = arith.constant 0 : index
    %21 = vector.load %arg1[%c0_9, %c0_10, %c0_11] : memref<3x64x256xbf16, #tpu.memory_space<vmem>>, vector<1x64x256xbf16>
    %22 = vector.shape_cast %21 : vector<1x64x256xbf16> to vector<64x256xbf16>
    %cst_12 = arith.constant dense<0.000000e+00> : vector<2x256xf32>
    %23 = tpu.matmul %20, %22, %cst_12 {dimension_numbers = #tpu.dot_dimension_numbers<[1], [0], [0], [1], [0, 0, 1, 1], [], []>} : vector<2x64xbf16>, vector<64x256xbf16>, vector<2x256xf32> -> vector<2x256xf32>
    %24 = arith.addf %19, %23 : vector<2x256xf32>
    %25 = vector.extract_strided_slice %24 {offsets = [0, 0], sizes = [2, 192], strides = [1, 1]} : vector<2x256xf32> to vector<2x192xf32>
    %26 = arith.negf %25 : vector<2x192xf32>
    %27 = math.exp %26 : vector<2x192xf32>
    %cst_13 = arith.constant 1.000000e+00 : f32
    %28 = vector.broadcast %cst_13 : f32 to vector<2x192xf32>
    %29 = arith.addf %28, %27 : vector<2x192xf32>
    %30 = arith.divf %28, %29 : vector<2x192xf32>
    %31 = vector.extract_strided_slice %24 {offsets = [0, 192], sizes = [2, 64], strides = [1, 1]} : vector<2x256xf32> to vector<2x64xf32>
    %32 = math.tanh %31 : vector<2x64xf32>
    %33 = vector.extract_strided_slice %30 {offsets = [0, 0], sizes = [2, 64], strides = [1, 1]} : vector<2x192xf32> to vector<2x64xf32>
    %34 = vector.extract_strided_slice %30 {offsets = [0, 64], sizes = [2, 64], strides = [1, 1]} : vector<2x192xf32> to vector<2x64xf32>
    %35 = vector.extract_strided_slice %30 {offsets = [0, 128], sizes = [2, 64], strides = [1, 1]} : vector<2x192xf32> to vector<2x64xf32>
    %36 = arith.mulf %34, %9 : vector<2x64xf32>
    %37 = arith.mulf %33, %32 : vector<2x64xf32>
    %38 = arith.addf %36, %37 : vector<2x64xf32>
    %39 = math.tanh %38 : vector<2x64xf32>
    %40 = arith.mulf %35, %39 : vector<2x64xf32>
    %41 = arith.truncf %40 : vector<2x64xf32> to vector<2x64xbf16>
    %c1_14 = arith.constant 1 : index
    %c0_15 = arith.constant 0 : index
    %c0_16 = arith.constant 0 : index
    %42 = vector.load %arg1[%c1_14, %c0_15, %c0_16] : memref<3x64x256xbf16, #tpu.memory_space<vmem>>, vector<1x64x256xbf16>
    %43 = vector.shape_cast %42 : vector<1x64x256xbf16> to vector<64x256xbf16>
    %cst_17 = arith.constant dense<0.000000e+00> : vector<2x256xf32>
    %44 = tpu.matmul %41, %43, %cst_17 {dimension_numbers = #tpu.dot_dimension_numbers<[1], [0], [0], [1], [0, 0, 1, 1], [], []>} : vector<2x64xbf16>, vector<64x256xbf16>, vector<2x256xf32> -> vector<2x256xf32>
    %45 = arith.addf %44, %13 : vector<2x256xf32>
    %46 = arith.addf %45, %8 : vector<2x256xf32>
    %47 = vector.extract_strided_slice %46 {offsets = [0, 0], sizes = [2, 192], strides = [1, 1]} : vector<2x256xf32> to vector<2x192xf32>
    %48 = arith.negf %47 : vector<2x192xf32>
    %49 = math.exp %48 : vector<2x192xf32>
    %cst_18 = arith.constant 1.000000e+00 : f32
    %50 = vector.broadcast %cst_18 : f32 to vector<2x192xf32>
    %51 = arith.addf %50, %49 : vector<2x192xf32>
    %52 = arith.divf %50, %51 : vector<2x192xf32>
    %53 = vector.extract_strided_slice %46 {offsets = [0, 192], sizes = [2, 64], strides = [1, 1]} : vector<2x256xf32> to vector<2x64xf32>
    %54 = math.tanh %53 : vector<2x64xf32>
    %55 = vector.extract_strided_slice %52 {offsets = [0, 0], sizes = [2, 64], strides = [1, 1]} : vector<2x192xf32> to vector<2x64xf32>
    %56 = vector.extract_strided_slice %52 {offsets = [0, 64], sizes = [2, 64], strides = [1, 1]} : vector<2x192xf32> to vector<2x64xf32>
    %57 = vector.extract_strided_slice %52 {offsets = [0, 128], sizes = [2, 64], strides = [1, 1]} : vector<2x192xf32> to vector<2x64xf32>
    %58 = arith.mulf %56, %9 : vector<2x64xf32>
    %59 = arith.mulf %55, %54 : vector<2x64xf32>
    %60 = arith.addf %58, %59 : vector<2x64xf32>
    %61 = math.tanh %60 : vector<2x64xf32>
    %62 = arith.mulf %57, %61 : vector<2x64xf32>
    %c1_i32 = arith.constant 1 : i32
    %63 = arith.truncf %62 : vector<2x64xf32> to vector<2x64xbf16>
    %c2_19 = arith.constant 2 : index
    %c0_20 = arith.constant 0 : index
    %c0_21 = arith.constant 0 : index
    %64 = vector.load %arg1[%c2_19, %c0_20, %c0_21] : memref<3x64x256xbf16, #tpu.memory_space<vmem>>, vector<1x64x256xbf16>
    %65 = vector.shape_cast %64 : vector<1x64x256xbf16> to vector<64x256xbf16>
    %cst_22 = arith.constant dense<0.000000e+00> : vector<2x256xf32>
    %66 = tpu.matmul %63, %65, %cst_22 {dimension_numbers = #tpu.dot_dimension_numbers<[1], [0], [0], [1], [0, 0, 1, 1], [], []>} : vector<2x64xbf16>, vector<64x256xbf16>, vector<2x256xf32> -> vector<2x256xf32>
    %67 = arith.index_cast %c1_i32 : i32 to index
    %c0_23 = arith.constant 0 : index
    %c0_24 = arith.constant 0 : index
    %68 = vector.load %arg0[%67, %c0_23, %c0_24] : memref<8x2x1xf32, #tpu.memory_space<vmem>>, vector<1x2x1xf32>
    %69 = vector.shape_cast %68 : vector<1x2x1xf32> to vector<2x1xf32>
    %70 = vector.broadcast %69 : vector<2x1xf32> to vector<2x256xf32>
    %71 = arith.mulf %70, %2 : vector<2x256xf32>
    %72 = arith.addf %71, %5 : vector<2x256xf32>
    %73 = arith.truncf %40 : vector<2x64xf32> to vector<2x64xbf16>
    %c0_25 = arith.constant 0 : index
    %c0_26 = arith.constant 0 : index
    %c0_27 = arith.constant 0 : index
    %74 = vector.load %arg1[%c0_25, %c0_26, %c0_27] : memref<3x64x256xbf16, #tpu.memory_space<vmem>>, vector<1x64x256xbf16>
    %75 = vector.shape_cast %74 : vector<1x64x256xbf16> to vector<64x256xbf16>
    %cst_28 = arith.constant dense<0.000000e+00> : vector<2x256xf32>
    %76 = tpu.matmul %73, %75, %cst_28 {dimension_numbers = #tpu.dot_dimension_numbers<[1], [0], [0], [1], [0, 0, 1, 1], [], []>} : vector<2x64xbf16>, vector<64x256xbf16>, vector<2x256xf32> -> vector<2x256xf32>
    %77 = arith.addf %72, %76 : vector<2x256xf32>
    %78 = vector.extract_strided_slice %77 {offsets = [0, 0], sizes = [2, 192], strides = [1, 1]} : vector<2x256xf32> to vector<2x192xf32>
    %79 = arith.negf %78 : vector<2x192xf32>
    %80 = math.exp %79 : vector<2x192xf32>
    %cst_29 = arith.constant 1.000000e+00 : f32
    %81 = vector.broadcast %cst_29 : f32 to vector<2x192xf32>
    %82 = arith.addf %81, %80 : vector<2x192xf32>
    %83 = arith.divf %81, %82 : vector<2x192xf32>
    %84 = vector.extract_strided_slice %77 {offsets = [0, 192], sizes = [2, 64], strides = [1, 1]} : vector<2x256xf32> to vector<2x64xf32>
    %85 = math.tanh %84 : vector<2x64xf32>
    %86 = vector.extract_strided_slice %83 {offsets = [0, 0], sizes = [2, 64], strides = [1, 1]} : vector<2x192xf32> to vector<2x64xf32>
    %87 = vector.extract_strided_slice %83 {offsets = [0, 64], sizes = [2, 64], strides = [1, 1]} : vector<2x192xf32> to vector<2x64xf32>
    %88 = vector.extract_strided_slice %83 {offsets = [0, 128], sizes = [2, 64], strides = [1, 1]} : vector<2x192xf32> to vector<2x64xf32>
    %89 = arith.mulf %87, %38 : vector<2x64xf32>
    %90 = arith.mulf %86, %85 : vector<2x64xf32>
    %91 = arith.addf %89, %90 : vector<2x64xf32>
    %92 = math.tanh %91 : vector<2x64xf32>
    %93 = arith.mulf %88, %92 : vector<2x64xf32>
    %94 = arith.truncf %93 : vector<2x64xf32> to vector<2x64xbf16>
    %c1_30 = arith.constant 1 : index
    %c0_31 = arith.constant 0 : index
    %c0_32 = arith.constant 0 : index
    %95 = vector.load %arg1[%c1_30, %c0_31, %c0_32] : memref<3x64x256xbf16, #tpu.memory_space<vmem>>, vector<1x64x256xbf16>
    %96 = vector.shape_cast %95 : vector<1x64x256xbf16> to vector<64x256xbf16>
    %cst_33 = arith.constant dense<0.000000e+00> : vector<2x256xf32>
    %97 = tpu.matmul %94, %96, %cst_33 {dimension_numbers = #tpu.dot_dimension_numbers<[1], [0], [0], [1], [0, 0, 1, 1], [], []>} : vector<2x64xbf16>, vector<64x256xbf16>, vector<2x256xf32> -> vector<2x256xf32>
    %98 = arith.addf %97, %66 : vector<2x256xf32>
    %99 = arith.addf %98, %8 : vector<2x256xf32>
    %100 = vector.extract_strided_slice %99 {offsets = [0, 0], sizes = [2, 192], strides = [1, 1]} : vector<2x256xf32> to vector<2x192xf32>
    %101 = arith.negf %100 : vector<2x192xf32>
    %102 = math.exp %101 : vector<2x192xf32>
    %cst_34 = arith.constant 1.000000e+00 : f32
    %103 = vector.broadcast %cst_34 : f32 to vector<2x192xf32>
    %104 = arith.addf %103, %102 : vector<2x192xf32>
    %105 = arith.divf %103, %104 : vector<2x192xf32>
    %106 = vector.extract_strided_slice %99 {offsets = [0, 192], sizes = [2, 64], strides = [1, 1]} : vector<2x256xf32> to vector<2x64xf32>
    %107 = math.tanh %106 : vector<2x64xf32>
    %108 = vector.extract_strided_slice %105 {offsets = [0, 0], sizes = [2, 64], strides = [1, 1]} : vector<2x192xf32> to vector<2x64xf32>
    %109 = vector.extract_strided_slice %105 {offsets = [0, 64], sizes = [2, 64], strides = [1, 1]} : vector<2x192xf32> to vector<2x64xf32>
    %110 = vector.extract_strided_slice %105 {offsets = [0, 128], sizes = [2, 64], strides = [1, 1]} : vector<2x192xf32> to vector<2x64xf32>
    %111 = arith.mulf %109, %60 : vector<2x64xf32>
    %112 = arith.mulf %108, %107 : vector<2x64xf32>
    %113 = arith.addf %111, %112 : vector<2x64xf32>
    %114 = math.tanh %113 : vector<2x64xf32>
    %115 = arith.mulf %110, %114 : vector<2x64xf32>
    %c2_i32 = arith.constant 2 : i32
    %116 = arith.truncf %115 : vector<2x64xf32> to vector<2x64xbf16>
    %c2_35 = arith.constant 2 : index
    %c0_36 = arith.constant 0 : index
    %c0_37 = arith.constant 0 : index
    %117 = vector.load %arg1[%c2_35, %c0_36, %c0_37] : memref<3x64x256xbf16, #tpu.memory_space<vmem>>, vector<1x64x256xbf16>
    %118 = vector.shape_cast %117 : vector<1x64x256xbf16> to vector<64x256xbf16>
    %cst_38 = arith.constant dense<0.000000e+00> : vector<2x256xf32>
    %119 = tpu.matmul %116, %118, %cst_38 {dimension_numbers = #tpu.dot_dimension_numbers<[1], [0], [0], [1], [0, 0, 1, 1], [], []>} : vector<2x64xbf16>, vector<64x256xbf16>, vector<2x256xf32> -> vector<2x256xf32>
    %120 = arith.index_cast %c2_i32 : i32 to index
    %c0_39 = arith.constant 0 : index
    %c0_40 = arith.constant 0 : index
    %121 = vector.load %arg0[%120, %c0_39, %c0_40] : memref<8x2x1xf32, #tpu.memory_space<vmem>>, vector<1x2x1xf32>
    %122 = vector.shape_cast %121 : vector<1x2x1xf32> to vector<2x1xf32>
    %123 = vector.broadcast %122 : vector<2x1xf32> to vector<2x256xf32>
    %124 = arith.mulf %123, %2 : vector<2x256xf32>
    %125 = arith.addf %124, %5 : vector<2x256xf32>
    %126 = arith.truncf %93 : vector<2x64xf32> to vector<2x64xbf16>
    %c0_41 = arith.constant 0 : index
    %c0_42 = arith.constant 0 : index
    %c0_43 = arith.constant 0 : index
    %127 = vector.load %arg1[%c0_41, %c0_42, %c0_43] : memref<3x64x256xbf16, #tpu.memory_space<vmem>>, vector<1x64x256xbf16>
    %128 = vector.shape_cast %127 : vector<1x64x256xbf16> to vector<64x256xbf16>
    %cst_44 = arith.constant dense<0.000000e+00> : vector<2x256xf32>
    %129 = tpu.matmul %126, %128, %cst_44 {dimension_numbers = #tpu.dot_dimension_numbers<[1], [0], [0], [1], [0, 0, 1, 1], [], []>} : vector<2x64xbf16>, vector<64x256xbf16>, vector<2x256xf32> -> vector<2x256xf32>
    %130 = arith.addf %125, %129 : vector<2x256xf32>
    %131 = vector.extract_strided_slice %130 {offsets = [0, 0], sizes = [2, 192], strides = [1, 1]} : vector<2x256xf32> to vector<2x192xf32>
    %132 = arith.negf %131 : vector<2x192xf32>
    %133 = math.exp %132 : vector<2x192xf32>
    %cst_45 = arith.constant 1.000000e+00 : f32
    %134 = vector.broadcast %cst_45 : f32 to vector<2x192xf32>
    %135 = arith.addf %134, %133 : vector<2x192xf32>
    %136 = arith.divf %134, %135 : vector<2x192xf32>
    %137 = vector.extract_strided_slice %130 {offsets = [0, 192], sizes = [2, 64], strides = [1, 1]} : vector<2x256xf32> to vector<2x64xf32>
    %138 = math.tanh %137 : vector<2x64xf32>
    %139 = vector.extract_strided_slice %136 {offsets = [0, 0], sizes = [2, 64], strides = [1, 1]} : vector<2x192xf32> to vector<2x64xf32>
    %140 = vector.extract_strided_slice %136 {offsets = [0, 64], sizes = [2, 64], strides = [1, 1]} : vector<2x192xf32> to vector<2x64xf32>
    %141 = vector.extract_strided_slice %136 {offsets = [0, 128], sizes = [2, 64], strides = [1, 1]} : vector<2x192xf32> to vector<2x64xf32>
    %142 = arith.mulf %140, %91 : vector<2x64xf32>
    %143 = arith.mulf %139, %138 : vector<2x64xf32>
    %144 = arith.addf %142, %143 : vector<2x64xf32>
    %145 = math.tanh %144 : vector<2x64xf32>
    %146 = arith.mulf %141, %145 : vector<2x64xf32>
    %147 = arith.truncf %146 : vector<2x64xf32> to vector<2x64xbf16>
    %c1_46 = arith.constant 1 : index
    %c0_47 = arith.constant 0 : index
    %c0_48 = arith.constant 0 : index
    %148 = vector.load %arg1[%c1_46, %c0_47, %c0_48] : memref<3x64x256xbf16, #tpu.memory_space<vmem>>, vector<1x64x256xbf16>
    %149 = vector.shape_cast %148 : vector<1x64x256xbf16> to vector<64x256xbf16>
    %cst_49 = arith.constant dense<0.000000e+00> : vector<2x256xf32>
    %150 = tpu.matmul %147, %149, %cst_49 {dimension_numbers = #tpu.dot_dimension_numbers<[1], [0], [0], [1], [0, 0, 1, 1], [], []>} : vector<2x64xbf16>, vector<64x256xbf16>, vector<2x256xf32> -> vector<2x256xf32>
    %151 = arith.addf %150, %119 : vector<2x256xf32>
    %152 = arith.addf %151, %8 : vector<2x256xf32>
    %153 = vector.extract_strided_slice %152 {offsets = [0, 0], sizes = [2, 192], strides = [1, 1]} : vector<2x256xf32> to vector<2x192xf32>
    %154 = arith.negf %153 : vector<2x192xf32>
    %155 = math.exp %154 : vector<2x192xf32>
    %cst_50 = arith.constant 1.000000e+00 : f32
    %156 = vector.broadcast %cst_50 : f32 to vector<2x192xf32>
    %157 = arith.addf %156, %155 : vector<2x192xf32>
    %158 = arith.divf %156, %157 : vector<2x192xf32>
    %159 = vector.extract_strided_slice %152 {offsets = [0, 192], sizes = [2, 64], strides = [1, 1]} : vector<2x256xf32> to vector<2x64xf32>
    %160 = math.tanh %159 : vector<2x64xf32>
    %161 = vector.extract_strided_slice %158 {offsets = [0, 0], sizes = [2, 64], strides = [1, 1]} : vector<2x192xf32> to vector<2x64xf32>
    %162 = vector.extract_strided_slice %158 {offsets = [0, 64], sizes = [2, 64], strides = [1, 1]} : vector<2x192xf32> to vector<2x64xf32>
    %163 = vector.extract_strided_slice %158 {offsets = [0, 128], sizes = [2, 64], strides = [1, 1]} : vector<2x192xf32> to vector<2x64xf32>
    %164 = arith.mulf %162, %113 : vector<2x64xf32>
    %165 = arith.mulf %161, %160 : vector<2x64xf32>
    %166 = arith.addf %164, %165 : vector<2x64xf32>
    %167 = math.tanh %166 : vector<2x64xf32>
    %168 = arith.mulf %163, %167 : vector<2x64xf32>
    %c3_i32 = arith.constant 3 : i32
    %169 = arith.truncf %168 : vector<2x64xf32> to vector<2x64xbf16>
    %c2_51 = arith.constant 2 : index
    %c0_52 = arith.constant 0 : index
    %c0_53 = arith.constant 0 : index
    %170 = vector.load %arg1[%c2_51, %c0_52, %c0_53] : memref<3x64x256xbf16, #tpu.memory_space<vmem>>, vector<1x64x256xbf16>
    %171 = vector.shape_cast %170 : vector<1x64x256xbf16> to vector<64x256xbf16>
    %cst_54 = arith.constant dense<0.000000e+00> : vector<2x256xf32>
    %172 = tpu.matmul %169, %171, %cst_54 {dimension_numbers = #tpu.dot_dimension_numbers<[1], [0], [0], [1], [0, 0, 1, 1], [], []>} : vector<2x64xbf16>, vector<64x256xbf16>, vector<2x256xf32> -> vector<2x256xf32>
    %173 = arith.index_cast %c3_i32 : i32 to index
    %c0_55 = arith.constant 0 : index
    %c0_56 = arith.constant 0 : index
    %174 = vector.load %arg0[%173, %c0_55, %c0_56] : memref<8x2x1xf32, #tpu.memory_space<vmem>>, vector<1x2x1xf32>
    %175 = vector.shape_cast %174 : vector<1x2x1xf32> to vector<2x1xf32>
    %176 = vector.broadcast %175 : vector<2x1xf32> to vector<2x256xf32>
    %177 = arith.mulf %176, %2 : vector<2x256xf32>
    %178 = arith.addf %177, %5 : vector<2x256xf32>
    %179 = arith.truncf %146 : vector<2x64xf32> to vector<2x64xbf16>
    %c0_57 = arith.constant 0 : index
    %c0_58 = arith.constant 0 : index
    %c0_59 = arith.constant 0 : index
    %180 = vector.load %arg1[%c0_57, %c0_58, %c0_59] : memref<3x64x256xbf16, #tpu.memory_space<vmem>>, vector<1x64x256xbf16>
    %181 = vector.shape_cast %180 : vector<1x64x256xbf16> to vector<64x256xbf16>
    %cst_60 = arith.constant dense<0.000000e+00> : vector<2x256xf32>
    %182 = tpu.matmul %179, %181, %cst_60 {dimension_numbers = #tpu.dot_dimension_numbers<[1], [0], [0], [1], [0, 0, 1, 1], [], []>} : vector<2x64xbf16>, vector<64x256xbf16>, vector<2x256xf32> -> vector<2x256xf32>
    %183 = arith.addf %178, %182 : vector<2x256xf32>
    %184 = vector.extract_strided_slice %183 {offsets = [0, 0], sizes = [2, 192], strides = [1, 1]} : vector<2x256xf32> to vector<2x192xf32>
    %185 = arith.negf %184 : vector<2x192xf32>
    %186 = math.exp %185 : vector<2x192xf32>
    %cst_61 = arith.constant 1.000000e+00 : f32
    %187 = vector.broadcast %cst_61 : f32 to vector<2x192xf32>
    %188 = arith.addf %187, %186 : vector<2x192xf32>
    %189 = arith.divf %187, %188 : vector<2x192xf32>
    %190 = vector.extract_strided_slice %183 {offsets = [0, 192], sizes = [2, 64], strides = [1, 1]} : vector<2x256xf32> to vector<2x64xf32>
    %191 = math.tanh %190 : vector<2x64xf32>
    %192 = vector.extract_strided_slice %189 {offsets = [0, 0], sizes = [2, 64], strides = [1, 1]} : vector<2x192xf32> to vector<2x64xf32>
    %193 = vector.extract_strided_slice %189 {offsets = [0, 64], sizes = [2, 64], strides = [1, 1]} : vector<2x192xf32> to vector<2x64xf32>
    %194 = vector.extract_strided_slice %189 {offsets = [0, 128], sizes = [2, 64], strides = [1, 1]} : vector<2x192xf32> to vector<2x64xf32>
    %195 = arith.mulf %193, %144 : vector<2x64xf32>
    %196 = arith.mulf %192, %191 : vector<2x64xf32>
    %197 = arith.addf %195, %196 : vector<2x64xf32>
    %198 = math.tanh %197 : vector<2x64xf32>
    %199 = arith.mulf %194, %198 : vector<2x64xf32>
    %200 = arith.truncf %199 : vector<2x64xf32> to vector<2x64xbf16>
    %c1_62 = arith.constant 1 : index
    %c0_63 = arith.constant 0 : index
    %c0_64 = arith.constant 0 : index
    %201 = vector.load %arg1[%c1_62, %c0_63, %c0_64] : memref<3x64x256xbf16, #tpu.memory_space<vmem>>, vector<1x64x256xbf16>
    %202 = vector.shape_cast %201 : vector<1x64x256xbf16> to vector<64x256xbf16>
    %cst_65 = arith.constant dense<0.000000e+00> : vector<2x256xf32>
    %203 = tpu.matmul %200, %202, %cst_65 {dimension_numbers = #tpu.dot_dimension_numbers<[1], [0], [0], [1], [0, 0, 1, 1], [], []>} : vector<2x64xbf16>, vector<64x256xbf16>, vector<2x256xf32> -> vector<2x256xf32>
    %204 = arith.addf %203, %172 : vector<2x256xf32>
    %205 = arith.addf %204, %8 : vector<2x256xf32>
    %206 = vector.extract_strided_slice %205 {offsets = [0, 0], sizes = [2, 192], strides = [1, 1]} : vector<2x256xf32> to vector<2x192xf32>
    %207 = arith.negf %206 : vector<2x192xf32>
    %208 = math.exp %207 : vector<2x192xf32>
    %cst_66 = arith.constant 1.000000e+00 : f32
    %209 = vector.broadcast %cst_66 : f32 to vector<2x192xf32>
    %210 = arith.addf %209, %208 : vector<2x192xf32>
    %211 = arith.divf %209, %210 : vector<2x192xf32>
    %212 = vector.extract_strided_slice %205 {offsets = [0, 192], sizes = [2, 64], strides = [1, 1]} : vector<2x256xf32> to vector<2x64xf32>
    %213 = math.tanh %212 : vector<2x64xf32>
    %214 = vector.extract_strided_slice %211 {offsets = [0, 0], sizes = [2, 64], strides = [1, 1]} : vector<2x192xf32> to vector<2x64xf32>
    %215 = vector.extract_strided_slice %211 {offsets = [0, 64], sizes = [2, 64], strides = [1, 1]} : vector<2x192xf32> to vector<2x64xf32>
    %216 = vector.extract_strided_slice %211 {offsets = [0, 128], sizes = [2, 64], strides = [1, 1]} : vector<2x192xf32> to vector<2x64xf32>
    %217 = arith.mulf %215, %166 : vector<2x64xf32>
    %218 = arith.mulf %214, %213 : vector<2x64xf32>
    %219 = arith.addf %217, %218 : vector<2x64xf32>
    %220 = math.tanh %219 : vector<2x64xf32>
    %221 = arith.mulf %216, %220 : vector<2x64xf32>
    %c4_i32 = arith.constant 4 : i32
    %222 = arith.truncf %221 : vector<2x64xf32> to vector<2x64xbf16>
    %c2_67 = arith.constant 2 : index
    %c0_68 = arith.constant 0 : index
    %c0_69 = arith.constant 0 : index
    %223 = vector.load %arg1[%c2_67, %c0_68, %c0_69] : memref<3x64x256xbf16, #tpu.memory_space<vmem>>, vector<1x64x256xbf16>
    %224 = vector.shape_cast %223 : vector<1x64x256xbf16> to vector<64x256xbf16>
    %cst_70 = arith.constant dense<0.000000e+00> : vector<2x256xf32>
    %225 = tpu.matmul %222, %224, %cst_70 {dimension_numbers = #tpu.dot_dimension_numbers<[1], [0], [0], [1], [0, 0, 1, 1], [], []>} : vector<2x64xbf16>, vector<64x256xbf16>, vector<2x256xf32> -> vector<2x256xf32>
    %226 = arith.index_cast %c4_i32 : i32 to index
    %c0_71 = arith.constant 0 : index
    %c0_72 = arith.constant 0 : index
    %227 = vector.load %arg0[%226, %c0_71, %c0_72] : memref<8x2x1xf32, #tpu.memory_space<vmem>>, vector<1x2x1xf32>
    %228 = vector.shape_cast %227 : vector<1x2x1xf32> to vector<2x1xf32>
    %229 = vector.broadcast %228 : vector<2x1xf32> to vector<2x256xf32>
    %230 = arith.mulf %229, %2 : vector<2x256xf32>
    %231 = arith.addf %230, %5 : vector<2x256xf32>
    %232 = arith.truncf %199 : vector<2x64xf32> to vector<2x64xbf16>
    %c0_73 = arith.constant 0 : index
    %c0_74 = arith.constant 0 : index
    %c0_75 = arith.constant 0 : index
    %233 = vector.load %arg1[%c0_73, %c0_74, %c0_75] : memref<3x64x256xbf16, #tpu.memory_space<vmem>>, vector<1x64x256xbf16>
    %234 = vector.shape_cast %233 : vector<1x64x256xbf16> to vector<64x256xbf16>
    %cst_76 = arith.constant dense<0.000000e+00> : vector<2x256xf32>
    %235 = tpu.matmul %232, %234, %cst_76 {dimension_numbers = #tpu.dot_dimension_numbers<[1], [0], [0], [1], [0, 0, 1, 1], [], []>} : vector<2x64xbf16>, vector<64x256xbf16>, vector<2x256xf32> -> vector<2x256xf32>
    %236 = arith.addf %231, %235 : vector<2x256xf32>
    %237 = vector.extract_strided_slice %236 {offsets = [0, 0], sizes = [2, 192], strides = [1, 1]} : vector<2x256xf32> to vector<2x192xf32>
    %238 = arith.negf %237 : vector<2x192xf32>
    %239 = math.exp %238 : vector<2x192xf32>
    %cst_77 = arith.constant 1.000000e+00 : f32
    %240 = vector.broadcast %cst_77 : f32 to vector<2x192xf32>
    %241 = arith.addf %240, %239 : vector<2x192xf32>
    %242 = arith.divf %240, %241 : vector<2x192xf32>
    %243 = vector.extract_strided_slice %236 {offsets = [0, 192], sizes = [2, 64], strides = [1, 1]} : vector<2x256xf32> to vector<2x64xf32>
    %244 = math.tanh %243 : vector<2x64xf32>
    %245 = vector.extract_strided_slice %242 {offsets = [0, 0], sizes = [2, 64], strides = [1, 1]} : vector<2x192xf32> to vector<2x64xf32>
    %246 = vector.extract_strided_slice %242 {offsets = [0, 64], sizes = [2, 64], strides = [1, 1]} : vector<2x192xf32> to vector<2x64xf32>
    %247 = vector.extract_strided_slice %242 {offsets = [0, 128], sizes = [2, 64], strides = [1, 1]} : vector<2x192xf32> to vector<2x64xf32>
    %248 = arith.mulf %246, %197 : vector<2x64xf32>
    %249 = arith.mulf %245, %244 : vector<2x64xf32>
    %250 = arith.addf %248, %249 : vector<2x64xf32>
    %251 = math.tanh %250 : vector<2x64xf32>
    %252 = arith.mulf %247, %251 : vector<2x64xf32>
    %253 = arith.truncf %252 : vector<2x64xf32> to vector<2x64xbf16>
    %c1_78 = arith.constant 1 : index
    %c0_79 = arith.constant 0 : index
    %c0_80 = arith.constant 0 : index
    %254 = vector.load %arg1[%c1_78, %c0_79, %c0_80] : memref<3x64x256xbf16, #tpu.memory_space<vmem>>, vector<1x64x256xbf16>
    %255 = vector.shape_cast %254 : vector<1x64x256xbf16> to vector<64x256xbf16>
    %cst_81 = arith.constant dense<0.000000e+00> : vector<2x256xf32>
    %256 = tpu.matmul %253, %255, %cst_81 {dimension_numbers = #tpu.dot_dimension_numbers<[1], [0], [0], [1], [0, 0, 1, 1], [], []>} : vector<2x64xbf16>, vector<64x256xbf16>, vector<2x256xf32> -> vector<2x256xf32>
    %257 = arith.addf %256, %225 : vector<2x256xf32>
    %258 = arith.addf %257, %8 : vector<2x256xf32>
    %259 = vector.extract_strided_slice %258 {offsets = [0, 0], sizes = [2, 192], strides = [1, 1]} : vector<2x256xf32> to vector<2x192xf32>
    %260 = arith.negf %259 : vector<2x192xf32>
    %261 = math.exp %260 : vector<2x192xf32>
    %cst_82 = arith.constant 1.000000e+00 : f32
    %262 = vector.broadcast %cst_82 : f32 to vector<2x192xf32>
    %263 = arith.addf %262, %261 : vector<2x192xf32>
    %264 = arith.divf %262, %263 : vector<2x192xf32>
    %265 = vector.extract_strided_slice %258 {offsets = [0, 192], sizes = [2, 64], strides = [1, 1]} : vector<2x256xf32> to vector<2x64xf32>
    %266 = math.tanh %265 : vector<2x64xf32>
    %267 = vector.extract_strided_slice %264 {offsets = [0, 0], sizes = [2, 64], strides = [1, 1]} : vector<2x192xf32> to vector<2x64xf32>
    %268 = vector.extract_strided_slice %264 {offsets = [0, 64], sizes = [2, 64], strides = [1, 1]} : vector<2x192xf32> to vector<2x64xf32>
    %269 = vector.extract_strided_slice %264 {offsets = [0, 128], sizes = [2, 64], strides = [1, 1]} : vector<2x192xf32> to vector<2x64xf32>
    %270 = arith.mulf %268, %219 : vector<2x64xf32>
    %271 = arith.mulf %267, %266 : vector<2x64xf32>
    %272 = arith.addf %270, %271 : vector<2x64xf32>
    %273 = math.tanh %272 : vector<2x64xf32>
    %274 = arith.mulf %269, %273 : vector<2x64xf32>
    %c5_i32 = arith.constant 5 : i32
    %275 = arith.truncf %274 : vector<2x64xf32> to vector<2x64xbf16>
    %c2_83 = arith.constant 2 : index
    %c0_84 = arith.constant 0 : index
    %c0_85 = arith.constant 0 : index
    %276 = vector.load %arg1[%c2_83, %c0_84, %c0_85] : memref<3x64x256xbf16, #tpu.memory_space<vmem>>, vector<1x64x256xbf16>
    %277 = vector.shape_cast %276 : vector<1x64x256xbf16> to vector<64x256xbf16>
    %cst_86 = arith.constant dense<0.000000e+00> : vector<2x256xf32>
    %278 = tpu.matmul %275, %277, %cst_86 {dimension_numbers = #tpu.dot_dimension_numbers<[1], [0], [0], [1], [0, 0, 1, 1], [], []>} : vector<2x64xbf16>, vector<64x256xbf16>, vector<2x256xf32> -> vector<2x256xf32>
    %279 = arith.index_cast %c5_i32 : i32 to index
    %c0_87 = arith.constant 0 : index
    %c0_88 = arith.constant 0 : index
    %280 = vector.load %arg0[%279, %c0_87, %c0_88] : memref<8x2x1xf32, #tpu.memory_space<vmem>>, vector<1x2x1xf32>
    %281 = vector.shape_cast %280 : vector<1x2x1xf32> to vector<2x1xf32>
    %282 = vector.broadcast %281 : vector<2x1xf32> to vector<2x256xf32>
    %283 = arith.mulf %282, %2 : vector<2x256xf32>
    %284 = arith.addf %283, %5 : vector<2x256xf32>
    %285 = arith.truncf %252 : vector<2x64xf32> to vector<2x64xbf16>
    %c0_89 = arith.constant 0 : index
    %c0_90 = arith.constant 0 : index
    %c0_91 = arith.constant 0 : index
    %286 = vector.load %arg1[%c0_89, %c0_90, %c0_91] : memref<3x64x256xbf16, #tpu.memory_space<vmem>>, vector<1x64x256xbf16>
    %287 = vector.shape_cast %286 : vector<1x64x256xbf16> to vector<64x256xbf16>
    %cst_92 = arith.constant dense<0.000000e+00> : vector<2x256xf32>
    %288 = tpu.matmul %285, %287, %cst_92 {dimension_numbers = #tpu.dot_dimension_numbers<[1], [0], [0], [1], [0, 0, 1, 1], [], []>} : vector<2x64xbf16>, vector<64x256xbf16>, vector<2x256xf32> -> vector<2x256xf32>
    %289 = arith.addf %284, %288 : vector<2x256xf32>
    %290 = vector.extract_strided_slice %289 {offsets = [0, 0], sizes = [2, 192], strides = [1, 1]} : vector<2x256xf32> to vector<2x192xf32>
    %291 = arith.negf %290 : vector<2x192xf32>
    %292 = math.exp %291 : vector<2x192xf32>
    %cst_93 = arith.constant 1.000000e+00 : f32
    %293 = vector.broadcast %cst_93 : f32 to vector<2x192xf32>
    %294 = arith.addf %293, %292 : vector<2x192xf32>
    %295 = arith.divf %293, %294 : vector<2x192xf32>
    %296 = vector.extract_strided_slice %289 {offsets = [0, 192], sizes = [2, 64], strides = [1, 1]} : vector<2x256xf32> to vector<2x64xf32>
    %297 = math.tanh %296 : vector<2x64xf32>
    %298 = vector.extract_strided_slice %295 {offsets = [0, 0], sizes = [2, 64], strides = [1, 1]} : vector<2x192xf32> to vector<2x64xf32>
    %299 = vector.extract_strided_slice %295 {offsets = [0, 64], sizes = [2, 64], strides = [1, 1]} : vector<2x192xf32> to vector<2x64xf32>
    %300 = vector.extract_strided_slice %295 {offsets = [0, 128], sizes = [2, 64], strides = [1, 1]} : vector<2x192xf32> to vector<2x64xf32>
    %301 = arith.mulf %299, %250 : vector<2x64xf32>
    %302 = arith.mulf %298, %297 : vector<2x64xf32>
    %303 = arith.addf %301, %302 : vector<2x64xf32>
    %304 = math.tanh %303 : vector<2x64xf32>
    %305 = arith.mulf %300, %304 : vector<2x64xf32>
    %306 = arith.truncf %305 : vector<2x64xf32> to vector<2x64xbf16>
    %c1_94 = arith.constant 1 : index
    %c0_95 = arith.constant 0 : index
    %c0_96 = arith.constant 0 : index
    %307 = vector.load %arg1[%c1_94, %c0_95, %c0_96] : memref<3x64x256xbf16, #tpu.memory_space<vmem>>, vector<1x64x256xbf16>
    %308 = vector.shape_cast %307 : vector<1x64x256xbf16> to vector<64x256xbf16>
    %cst_97 = arith.constant dense<0.000000e+00> : vector<2x256xf32>
    %309 = tpu.matmul %306, %308, %cst_97 {dimension_numbers = #tpu.dot_dimension_numbers<[1], [0], [0], [1], [0, 0, 1, 1], [], []>} : vector<2x64xbf16>, vector<64x256xbf16>, vector<2x256xf32> -> vector<2x256xf32>
    %310 = arith.addf %309, %278 : vector<2x256xf32>
    %311 = arith.addf %310, %8 : vector<2x256xf32>
    %312 = vector.extract_strided_slice %311 {offsets = [0, 0], sizes = [2, 192], strides = [1, 1]} : vector<2x256xf32> to vector<2x192xf32>
    %313 = arith.negf %312 : vector<2x192xf32>
    %314 = math.exp %313 : vector<2x192xf32>
    %cst_98 = arith.constant 1.000000e+00 : f32
    %315 = vector.broadcast %cst_98 : f32 to vector<2x192xf32>
    %316 = arith.addf %315, %314 : vector<2x192xf32>
    %317 = arith.divf %315, %316 : vector<2x192xf32>
    %318 = vector.extract_strided_slice %311 {offsets = [0, 192], sizes = [2, 64], strides = [1, 1]} : vector<2x256xf32> to vector<2x64xf32>
    %319 = math.tanh %318 : vector<2x64xf32>
    %320 = vector.extract_strided_slice %317 {offsets = [0, 0], sizes = [2, 64], strides = [1, 1]} : vector<2x192xf32> to vector<2x64xf32>
    %321 = vector.extract_strided_slice %317 {offsets = [0, 64], sizes = [2, 64], strides = [1, 1]} : vector<2x192xf32> to vector<2x64xf32>
    %322 = vector.extract_strided_slice %317 {offsets = [0, 128], sizes = [2, 64], strides = [1, 1]} : vector<2x192xf32> to vector<2x64xf32>
    %323 = arith.mulf %321, %272 : vector<2x64xf32>
    %324 = arith.mulf %320, %319 : vector<2x64xf32>
    %325 = arith.addf %323, %324 : vector<2x64xf32>
    %326 = math.tanh %325 : vector<2x64xf32>
    %327 = arith.mulf %322, %326 : vector<2x64xf32>
    %c6_i32 = arith.constant 6 : i32
    %328 = arith.truncf %327 : vector<2x64xf32> to vector<2x64xbf16>
    %c2_99 = arith.constant 2 : index
    %c0_100 = arith.constant 0 : index
    %c0_101 = arith.constant 0 : index
    %329 = vector.load %arg1[%c2_99, %c0_100, %c0_101] : memref<3x64x256xbf16, #tpu.memory_space<vmem>>, vector<1x64x256xbf16>
    %330 = vector.shape_cast %329 : vector<1x64x256xbf16> to vector<64x256xbf16>
    %cst_102 = arith.constant dense<0.000000e+00> : vector<2x256xf32>
    %331 = tpu.matmul %328, %330, %cst_102 {dimension_numbers = #tpu.dot_dimension_numbers<[1], [0], [0], [1], [0, 0, 1, 1], [], []>} : vector<2x64xbf16>, vector<64x256xbf16>, vector<2x256xf32> -> vector<2x256xf32>
    %332 = arith.index_cast %c6_i32 : i32 to index
    %c0_103 = arith.constant 0 : index
    %c0_104 = arith.constant 0 : index
    %333 = vector.load %arg0[%332, %c0_103, %c0_104] : memref<8x2x1xf32, #tpu.memory_space<vmem>>, vector<1x2x1xf32>
    %334 = vector.shape_cast %333 : vector<1x2x1xf32> to vector<2x1xf32>
    %335 = vector.broadcast %334 : vector<2x1xf32> to vector<2x256xf32>
    %336 = arith.mulf %335, %2 : vector<2x256xf32>
    %337 = arith.addf %336, %5 : vector<2x256xf32>
    %338 = arith.truncf %305 : vector<2x64xf32> to vector<2x64xbf16>
    %c0_105 = arith.constant 0 : index
    %c0_106 = arith.constant 0 : index
    %c0_107 = arith.constant 0 : index
    %339 = vector.load %arg1[%c0_105, %c0_106, %c0_107] : memref<3x64x256xbf16, #tpu.memory_space<vmem>>, vector<1x64x256xbf16>
    %340 = vector.shape_cast %339 : vector<1x64x256xbf16> to vector<64x256xbf16>
    %cst_108 = arith.constant dense<0.000000e+00> : vector<2x256xf32>
    %341 = tpu.matmul %338, %340, %cst_108 {dimension_numbers = #tpu.dot_dimension_numbers<[1], [0], [0], [1], [0, 0, 1, 1], [], []>} : vector<2x64xbf16>, vector<64x256xbf16>, vector<2x256xf32> -> vector<2x256xf32>
    %342 = arith.addf %337, %341 : vector<2x256xf32>
    %343 = vector.extract_strided_slice %342 {offsets = [0, 0], sizes = [2, 192], strides = [1, 1]} : vector<2x256xf32> to vector<2x192xf32>
    %344 = arith.negf %343 : vector<2x192xf32>
    %345 = math.exp %344 : vector<2x192xf32>
    %cst_109 = arith.constant 1.000000e+00 : f32
    %346 = vector.broadcast %cst_109 : f32 to vector<2x192xf32>
    %347 = arith.addf %346, %345 : vector<2x192xf32>
    %348 = arith.divf %346, %347 : vector<2x192xf32>
    %349 = vector.extract_strided_slice %342 {offsets = [0, 192], sizes = [2, 64], strides = [1, 1]} : vector<2x256xf32> to vector<2x64xf32>
    %350 = math.tanh %349 : vector<2x64xf32>
    %351 = vector.extract_strided_slice %348 {offsets = [0, 0], sizes = [2, 64], strides = [1, 1]} : vector<2x192xf32> to vector<2x64xf32>
    %352 = vector.extract_strided_slice %348 {offsets = [0, 64], sizes = [2, 64], strides = [1, 1]} : vector<2x192xf32> to vector<2x64xf32>
    %353 = vector.extract_strided_slice %348 {offsets = [0, 128], sizes = [2, 64], strides = [1, 1]} : vector<2x192xf32> to vector<2x64xf32>
    %354 = arith.mulf %352, %303 : vector<2x64xf32>
    %355 = arith.mulf %351, %350 : vector<2x64xf32>
    %356 = arith.addf %354, %355 : vector<2x64xf32>
    %357 = math.tanh %356 : vector<2x64xf32>
    %358 = arith.mulf %353, %357 : vector<2x64xf32>
    %359 = arith.truncf %358 : vector<2x64xf32> to vector<2x64xbf16>
    %c1_110 = arith.constant 1 : index
    %c0_111 = arith.constant 0 : index
    %c0_112 = arith.constant 0 : index
    %360 = vector.load %arg1[%c1_110, %c0_111, %c0_112] : memref<3x64x256xbf16, #tpu.memory_space<vmem>>, vector<1x64x256xbf16>
    %361 = vector.shape_cast %360 : vector<1x64x256xbf16> to vector<64x256xbf16>
    %cst_113 = arith.constant dense<0.000000e+00> : vector<2x256xf32>
    %362 = tpu.matmul %359, %361, %cst_113 {dimension_numbers = #tpu.dot_dimension_numbers<[1], [0], [0], [1], [0, 0, 1, 1], [], []>} : vector<2x64xbf16>, vector<64x256xbf16>, vector<2x256xf32> -> vector<2x256xf32>
    %363 = arith.addf %362, %331 : vector<2x256xf32>
    %364 = arith.addf %363, %8 : vector<2x256xf32>
    %365 = vector.extract_strided_slice %364 {offsets = [0, 0], sizes = [2, 192], strides = [1, 1]} : vector<2x256xf32> to vector<2x192xf32>
    %366 = arith.negf %365 : vector<2x192xf32>
    %367 = math.exp %366 : vector<2x192xf32>
    %cst_114 = arith.constant 1.000000e+00 : f32
    %368 = vector.broadcast %cst_114 : f32 to vector<2x192xf32>
    %369 = arith.addf %368, %367 : vector<2x192xf32>
    %370 = arith.divf %368, %369 : vector<2x192xf32>
    %371 = vector.extract_strided_slice %364 {offsets = [0, 192], sizes = [2, 64], strides = [1, 1]} : vector<2x256xf32> to vector<2x64xf32>
    %372 = math.tanh %371 : vector<2x64xf32>
    %373 = vector.extract_strided_slice %370 {offsets = [0, 0], sizes = [2, 64], strides = [1, 1]} : vector<2x192xf32> to vector<2x64xf32>
    %374 = vector.extract_strided_slice %370 {offsets = [0, 64], sizes = [2, 64], strides = [1, 1]} : vector<2x192xf32> to vector<2x64xf32>
    %375 = vector.extract_strided_slice %370 {offsets = [0, 128], sizes = [2, 64], strides = [1, 1]} : vector<2x192xf32> to vector<2x64xf32>
    %376 = arith.mulf %374, %325 : vector<2x64xf32>
    %377 = arith.mulf %373, %372 : vector<2x64xf32>
    %378 = arith.addf %376, %377 : vector<2x64xf32>
    %379 = math.tanh %378 : vector<2x64xf32>
    %380 = arith.mulf %375, %379 : vector<2x64xf32>
    %c7_i32 = arith.constant 7 : i32
    %381 = arith.truncf %380 : vector<2x64xf32> to vector<2x64xbf16>
    %c2_115 = arith.constant 2 : index
    %c0_116 = arith.constant 0 : index
    %c0_117 = arith.constant 0 : index
    %382 = vector.load %arg1[%c2_115, %c0_116, %c0_117] : memref<3x64x256xbf16, #tpu.memory_space<vmem>>, vector<1x64x256xbf16>
    %383 = vector.shape_cast %382 : vector<1x64x256xbf16> to vector<64x256xbf16>
    %cst_118 = arith.constant dense<0.000000e+00> : vector<2x256xf32>
    %384 = tpu.matmul %381, %383, %cst_118 {dimension_numbers = #tpu.dot_dimension_numbers<[1], [0], [0], [1], [0, 0, 1, 1], [], []>} : vector<2x64xbf16>, vector<64x256xbf16>, vector<2x256xf32> -> vector<2x256xf32>
    %385 = arith.index_cast %c7_i32 : i32 to index
    %c0_119 = arith.constant 0 : index
    %c0_120 = arith.constant 0 : index
    %386 = vector.load %arg0[%385, %c0_119, %c0_120] : memref<8x2x1xf32, #tpu.memory_space<vmem>>, vector<1x2x1xf32>
    %387 = vector.shape_cast %386 : vector<1x2x1xf32> to vector<2x1xf32>
    %388 = vector.broadcast %387 : vector<2x1xf32> to vector<2x256xf32>
    %389 = arith.mulf %388, %2 : vector<2x256xf32>
    %390 = arith.addf %389, %5 : vector<2x256xf32>
    %391 = arith.truncf %358 : vector<2x64xf32> to vector<2x64xbf16>
    %c0_121 = arith.constant 0 : index
    %c0_122 = arith.constant 0 : index
    %c0_123 = arith.constant 0 : index
    %392 = vector.load %arg1[%c0_121, %c0_122, %c0_123] : memref<3x64x256xbf16, #tpu.memory_space<vmem>>, vector<1x64x256xbf16>
    %393 = vector.shape_cast %392 : vector<1x64x256xbf16> to vector<64x256xbf16>
    %cst_124 = arith.constant dense<0.000000e+00> : vector<2x256xf32>
    %394 = tpu.matmul %391, %393, %cst_124 {dimension_numbers = #tpu.dot_dimension_numbers<[1], [0], [0], [1], [0, 0, 1, 1], [], []>} : vector<2x64xbf16>, vector<64x256xbf16>, vector<2x256xf32> -> vector<2x256xf32>
    %395 = arith.addf %390, %394 : vector<2x256xf32>
    %396 = vector.extract_strided_slice %395 {offsets = [0, 0], sizes = [2, 192], strides = [1, 1]} : vector<2x256xf32> to vector<2x192xf32>
    %397 = arith.negf %396 : vector<2x192xf32>
    %398 = math.exp %397 : vector<2x192xf32>
    %cst_125 = arith.constant 1.000000e+00 : f32
    %399 = vector.broadcast %cst_125 : f32 to vector<2x192xf32>
    %400 = arith.addf %399, %398 : vector<2x192xf32>
    %401 = arith.divf %399, %400 : vector<2x192xf32>
    %402 = vector.extract_strided_slice %395 {offsets = [0, 192], sizes = [2, 64], strides = [1, 1]} : vector<2x256xf32> to vector<2x64xf32>
    %403 = math.tanh %402 : vector<2x64xf32>
    %404 = vector.extract_strided_slice %401 {offsets = [0, 0], sizes = [2, 64], strides = [1, 1]} : vector<2x192xf32> to vector<2x64xf32>
    %405 = vector.extract_strided_slice %401 {offsets = [0, 64], sizes = [2, 64], strides = [1, 1]} : vector<2x192xf32> to vector<2x64xf32>
    %406 = vector.extract_strided_slice %401 {offsets = [0, 128], sizes = [2, 64], strides = [1, 1]} : vector<2x192xf32> to vector<2x64xf32>
    %407 = arith.mulf %405, %356 : vector<2x64xf32>
    %408 = arith.mulf %404, %403 : vector<2x64xf32>
    %409 = arith.addf %407, %408 : vector<2x64xf32>
    %410 = math.tanh %409 : vector<2x64xf32>
    %411 = arith.mulf %406, %410 : vector<2x64xf32>
    %412 = arith.truncf %411 : vector<2x64xf32> to vector<2x64xbf16>
    %c1_126 = arith.constant 1 : index
    %c0_127 = arith.constant 0 : index
    %c0_128 = arith.constant 0 : index
    %413 = vector.load %arg1[%c1_126, %c0_127, %c0_128] : memref<3x64x256xbf16, #tpu.memory_space<vmem>>, vector<1x64x256xbf16>
    %414 = vector.shape_cast %413 : vector<1x64x256xbf16> to vector<64x256xbf16>
    %cst_129 = arith.constant dense<0.000000e+00> : vector<2x256xf32>
    %415 = tpu.matmul %412, %414, %cst_129 {dimension_numbers = #tpu.dot_dimension_numbers<[1], [0], [0], [1], [0, 0, 1, 1], [], []>} : vector<2x64xbf16>, vector<64x256xbf16>, vector<2x256xf32> -> vector<2x256xf32>
    %416 = arith.addf %415, %384 : vector<2x256xf32>
    %417 = arith.addf %416, %8 : vector<2x256xf32>
    %418 = vector.extract_strided_slice %417 {offsets = [0, 0], sizes = [2, 192], strides = [1, 1]} : vector<2x256xf32> to vector<2x192xf32>
    %419 = arith.negf %418 : vector<2x192xf32>
    %420 = math.exp %419 : vector<2x192xf32>
    %cst_130 = arith.constant 1.000000e+00 : f32
    %421 = vector.broadcast %cst_130 : f32 to vector<2x192xf32>
    %422 = arith.addf %421, %420 : vector<2x192xf32>
    %423 = arith.divf %421, %422 : vector<2x192xf32>
    %424 = vector.extract_strided_slice %417 {offsets = [0, 192], sizes = [2, 64], strides = [1, 1]} : vector<2x256xf32> to vector<2x64xf32>
    %425 = math.tanh %424 : vector<2x64xf32>
    %426 = vector.extract_strided_slice %423 {offsets = [0, 0], sizes = [2, 64], strides = [1, 1]} : vector<2x192xf32> to vector<2x64xf32>
    %427 = vector.extract_strided_slice %423 {offsets = [0, 64], sizes = [2, 64], strides = [1, 1]} : vector<2x192xf32> to vector<2x64xf32>
    %428 = vector.extract_strided_slice %423 {offsets = [0, 128], sizes = [2, 64], strides = [1, 1]} : vector<2x192xf32> to vector<2x64xf32>
    %429 = arith.mulf %427, %378 : vector<2x64xf32>
    %430 = arith.mulf %426, %425 : vector<2x64xf32>
    %431 = arith.addf %429, %430 : vector<2x64xf32>
    %432 = math.tanh %431 : vector<2x64xf32>
    %433 = arith.mulf %428, %432 : vector<2x64xf32>
    %c8_i32 = arith.constant 8 : i32
    %c0_131 = arith.constant 0 : index
    %c0_132 = arith.constant 0 : index
    %434 = vector.load %arg3[%c0_131, %c0_132] : memref<64x1xf32, #tpu.memory_space<vmem>>, vector<64x1xf32>
    %cst_133 = arith.constant dense<0.000000e+00> : vector<2x1xf32>
    %435 = tpu.matmul %433, %434, %cst_133 {dimension_numbers = #tpu.dot_dimension_numbers<[1], [0], [0], [1], [0, 0, 1, 1], [], []>} : vector<2x64xf32>, vector<64x1xf32>, vector<2x1xf32> -> vector<2x1xf32>
    %c3 = arith.constant 3 : index
    %c0_134 = arith.constant 0 : index
    %436 = vector.load %arg2[%c3, %c0_134] : memref<4x256xf32, #tpu.memory_space<vmem>>, vector<1x1xf32>
    %437 = vector.broadcast %436 : vector<1x1xf32> to vector<2x1xf32>
    %438 = arith.addf %435, %437 : vector<2x1xf32>
    %c0_135 = arith.constant 0 : index
    %c0_136 = arith.constant 0 : index
    %439 = vector.load %arg4[%c0_135, %c0_136] : memref<2x1xf32, #tpu.memory_space<vmem>>, vector<2x1xf32>
    tpu.vector_store %arg4[%c0_135, %c0_136], %438 {strides = array<i32>} : memref<2x1xf32, #tpu.memory_space<vmem>>, vector<2x1xf32>,
    return
  }
}

</mosaic_0001>

<bundles_post_ra>
// kernel: tpu_custom_call.1
= control target key start
LH: loop header
LB: loop body
LE: loop exit
PB: predicated region body
PF: predicated region fallthrough
CT: control target
= control target key end

     0   :  { %9 = vsyncpa [#allocation3], 0  ;;  %s2371_s15 = smov [#allocation2]   ;;  %s2969_s0 = inlined_call_operand.vmem [shape: f32[8,2,1], index: 0, kind: input, shape index: {}]   ;;  %s2970_s1 = inlined_call_operand.hbm [shape: bf16[3,64,256], index: 1, kind: input, shape index: {}]   ;;  %s2971_s2 = inlined_call_operand.vmem [shape: f32[4,256], index: 2, kind: input, shape index: {}]   ;;  %s2972_s3 = inlined_call_operand.vmem [shape: f32[64,1], index: 3, kind: input, shape index: {}]   ;;  %s2973_s4 = inlined_call_operand.vmem [shape: f32[2,1], index: 4, kind: output, shape index: {}]  }
   0x1   :  { %s17_s16 = sshll.u32 %s2371_s15, 4  ;;  %s2347_s19 = scalar_lea.hbm %s2970_s1, 3072  ;;  %s18_s16 = int_to_ptr.vmem [resolvable:$true] %s17_s16 }
   0x2   :  { %p2348_p0 = scmp.ne.s32.totalorder %s2970_s1, %s2347_s19  ;;  %p2351_p1 = scmp.lt.u32.totalorder %s2347_s19, %s2970_s1 }
   0x4   :  { %p2353_p2 = pnand %p2351_p1, %p2348_p0 }
   0x6   :  { %2356 = shalt.err (!%p2353_p2)
}
   0x7   :  { %s2357_s24 = scalar_lea.vmem %s18_s16, 3072  ;;  %p2362_p4 = scmp.lt.s32.totalorder %s18_s16, %s18_s16 }
   0x8   :  { %p2358_p3 = scmp.ne.s32.totalorder %s18_s16, %s2357_s24  ;;  %p2363_p5 = scmp.lt.s32.totalorder %s2357_s24, %s2357_s24 }
   0xa   :  { %p2364_p6 = por %p2363_p5, %p2362_p4 }
   0xc   :  { %p2365_p7 = pnand %p2364_p6, %p2358_p3 }
   0xe   :  { %2368 = shalt.err (!%p2365_p7)
}
   0xf   :  { %s2372_s25 = smov 128   ;;  %s2373_s26 = smov 8  }
  0x10   :  { %23 = dma.hbm_to_vmem [thread:$0]  %s2970_s1, 3072, %s18_s16, [#allocation3], %s2372_s25, %s2372_s25, %s2373_s26  }
  0x11   :  { %2369 = dma.done.wait [#allocation3], 3072  }
  0x12   :  { %2370 = vsyncadd [#allocation3], 4294964224  ;;  %v2374_v0 = vmov 0   ;;  %v2420_v1 = vld [vmem:[#allocation2 + $0x4] ss:$8 sps:$4 sm:$0xff]   ;;  %v34_v10 = vlaneseq  ;;  %s2375_s8 = smov 64  }
  0x13   :  { %254 = vmatprep.mubr.bf16.mxu1 %v2374_v0  ;;  %2093 = vset.pattern.permute.xlu0 %v2374_v0  ;;  %v2422_v2 = vld [vmem:[#allocation2] ss:$8 sps:$4 sm:$0xff]   ;;  %v2425_v3 = vld [vmem:[#allocation2 + $0x14] ss:$8 sps:$4 sm:$0xff]   ;;  %v2428_v4 = vld [vmem:[#allocation2 + $0x10] ss:$8 sps:$4 sm:$0xff]  }
  0x14   :  { %155 = vmatprep.mubr.bf16.mxu0 %v2374_v0  ;;  %2094 = vset.pattern.permute.xlu1 %v2374_v0  ;;  %v2431_v5 = vld [vmem:[#allocation2 + $0x24] ss:$8 sps:$4 sm:$0xff]   ;;  %v164_v6 = vld [vmem:[%s2969_s0] sm:$0x3]  ;;  %v2438_v8 = vld [vmem:[#allocation2 + $0x34] ss:$8 sps:$4 sm:$0xff]  }
  0x15   :  { %222 = vmatprep.subr.bf16.mxu1 %v2420_v1  ;;  %v2436_v7 = vld [vmem:[#allocation2 + $0x20] ss:$8 sps:$4 sm:$0xff]   ;;  %167 = vperm.xlu0 %2093, %v164_v6   ;;  %v2442_v9 = vld [vmem:[#allocation2 + $0x30] ss:$8 sps:$4 sm:$0xff]   ;;  %v35_v11 = vshrl.u32 %v34_v10, 7  ;;  %vm119_vm0 = vcmask 523264  }
  0x16   :  { %223 = vmatpush1.bf16.msra.mxu1 %v2422_v2  ;;  %v32_v13 = vld [vmem:[%s2971_s2] ss:$4 sm:$0x3]  ;;  %v1956_v16 = vld [vmem:[%s2971_s2 + $0x1] ss:$4 sm:$0x3] }
  0x17   :  { %224 = vmatprep.subr.bf16.mxu1 %v2425_v3  ;;  %v2449_v12 = vsub.s32 1, %v35_v11  ;;  %v1988_v26 = vld [vmem:[%s2969_s0 + $0x2] sm:$0x3]  ;;  %v2472_v27 = vsub.s32 0, %v35_v11  ;;  %v2483_v39 = vld [vmem:[#allocation2 + $0x84] ss:$8 sps:$4 sm:$0xff]  }
  0x18   :  { %v2485_v40 = vld [vmem:[#allocation2 + $0x80] ss:$8 sps:$4 sm:$0xff]   ;;  %v2487_v41 = vld [vmem:[#allocation2 + $0x94] ss:$8 sps:$4 sm:$0xff]   ;;  %123 = vmatprep.subr.bf16.mxu0 %v2483_v39  ;;  %v2492_v42 = vld [vmem:[#allocation2 + $0x90] ss:$8 sps:$4 sm:$0xff]  }
  0x19   :  { %v2455_v14 = vrot.slane %v32_v13, %v2449_v12  ;;  %v2462_v18 = vrot.slane %v1956_v16, %v2449_v12  ;;  %v2475_v28 = vrot.slane %v32_v13, %v2472_v27  ;;  %v2479_v30 = vrot.slane %v1956_v16, %v2472_v27  ;;  %124 = vmatpush1.bf16.msra.mxu0 %v2485_v40  ;;  %v2496_v43 = vld [vmem:[#allocation2 + $0xa4] ss:$8 sps:$4 sm:$0xff]   ;;  %v2500_v44 = vld [vmem:[#allocation2 + $0xa0] ss:$8 sps:$4 sm:$0xff]   ;;  %v2504_v45 = vld [vmem:[#allocation2 + $0xb4] ss:$8 sps:$4 sm:$0xff]  }
  0x1a   :  { %225 = vmatpush1.bf16.msra.mxu1 %v2428_v4  ;;  %125 = vmatprep.subr.bf16.mxu0 %v2487_v41  ;;  %v2508_v46 = vld [vmem:[#allocation2 + $0xb0] ss:$8 sps:$4 sm:$0xff]   ;;  %v2512_v47 = vld [vmem:[#allocation2 + $0x44] ss:$8 sps:$4 sm:$0xff]   ;;  %v2516_v48 = vld [vmem:[#allocation2 + $0x40] ss:$8 sps:$4 sm:$0xff]  }
  0x1b   :  { %226 = vmatprep.subr.bf16.mxu1 %v2431_v5  ;;  %v2520_v49 = vld [vmem:[#allocation2 + $0x54] ss:$8 sps:$4 sm:$0xff]   ;;  %v2525_v50 = vld [vmem:[#allocation2 + $0x50] ss:$8 sps:$4 sm:$0xff]   ;;  %v2529_v51 = vld [vmem:[#allocation2 + $0x64] ss:$8 sps:$4 sm:$0xff]  }
  0x1c   :  { %v2532_v52 = vld [vmem:[#allocation2 + $0x60] ss:$8 sps:$4 sm:$0xff]   ;;  %v2535_v53 = vld [vmem:[#allocation2 + $0x74] ss:$8 sps:$4 sm:$0xff]   ;;  %v2539_v55 = vld [vmem:[#allocation2 + $0x70] ss:$8 sps:$4 sm:$0xff]  }
  0x1d   :  { %126 = vmatpush1.bf16.msra.mxu0 %v2492_v42  ;;  %vm2377_vm1 = vmmov 0   ;;  %vm1949_vm2 = vcmask 1024  }
  0x1e   :  { %227 = vmatpush1.bf16.msra.mxu1 %v2436_v7  ;;  %127 = vmatprep.subr.bf16.mxu0 %v2496_v43 }
  0x1f   :  { %228 = vmatprep.subr.bf16.mxu1 %v2438_v8 }
  0x21   :  { %128 = vmatpush1.bf16.msra.mxu0 %v2500_v44 }
  0x22   :  { %229 = vmatpush1.bf16.msra.mxu1 %v2442_v9  ;;  %129 = vmatprep.subr.bf16.mxu0 %v2504_v45 }
  0x23   :  { %425 = vmatprep.subr.bf16.mxu1 %v2483_v39 }
  0x25   :  { %255 = vmatmul.mubr.bf16.vlgmr.msra.gmra.mrb[0].mxu1 %v2374_v0  ;;  %130 = vmatpush1.bf16.msra.mxu0 %v2508_v46 }
  0x26   :  { %457 = vmatprep.mubr.bf16.mxu1 %v2374_v0  ;;  %426 = vmatpush1.bf16.msra.mxu1 %v2485_v40 }
  0x27   :  { %427 = vmatprep.subr.bf16.mxu1 %v2487_v41  ;;  %348 = vmatprep.subr.bf16.mxu0 %v2512_v47 }
  0x28   :  { %156 = vmatmul.mubr.bf16.vlgmr.msra.gmra.mrb[0].mxu0 %v2374_v0 }
  0x29   :  { %349 = vmatpush1.bf16.msra.mxu0 %v2516_v48  ;;  %380 = vmatprep.mubr.bf16.mxu0 %v2374_v0 }
  0x2a   :  { %428 = vmatpush1.bf16.msra.mxu1 %v2492_v42  ;;  %350 = vmatprep.subr.bf16.mxu0 %v2520_v49 }
  0x2b   :  { %429 = vmatprep.subr.bf16.mxu1 %v2496_v43 }
  0x2d   :  { %351 = vmatpush1.bf16.msra.mxu0 %v2525_v50 }
  0x2e   :  { %430 = vmatpush1.bf16.msra.mxu1 %v2500_v44  ;;  %352 = vmatprep.subr.bf16.mxu0 %v2529_v51 }
  0x2f   :  { %431 = vmatprep.subr.bf16.mxu1 %v2504_v45 }
  0x31   :  { %353 = vmatpush1.bf16.msra.mxu0 %v2532_v52 }
  0x32   :  { %432 = vmatpush1.bf16.msra.mxu1 %v2508_v46  ;;  %354 = vmatprep.subr.bf16.mxu0 %v2535_v53 }
  0x33   :  { %554 = vmatprep.subr.bf16.mxu1 %v2512_v47 }
  0x35   :  { %355 = vmatpush1.bf16.msra.mxu0 %v2539_v55 }
  0x36   :  { %477 = vmatprep.subr.bf16.mxu0 %v2420_v1 }
  0x94   :  { %v168_v15 = vpop.permute.xlu0 %167 }
  0x95   :  { %v171_v17 = vmul.f32 %v168_v15, %v2455_v14  ;;  %v170_v29 = vmul.f32 %v168_v15, %v2475_v28 }
  0x97   :  { %v173_v19 = vadd.f32 %v171_v17, %v2462_v18  ;;  %v172_v31 = vadd.f32 %v170_v29, %v2479_v30  ;;  %v1957_v17 = vld [vmem:[%s2971_s2 + $0x2] ss:$4 sm:$0x3] }
  0xf8   :  { %v256_v20 = vpop.f32.mrb[0].mxu1 }
  0xf9   :  { %v258_v21 = vpop.f32.mrb[1].mxu1  ;;  %v263_v32 = vadd.f32 %v256_v20, %v172_v31  ;;  %v2572_v20 = vrot.slane %v1957_v17, %v2449_v12 }
  0xfa   :  { %v2465_v22 = vadd.f32 %v258_v21, %v173_v19  ;;  %v260_v23 = vpop.f32.mrb[2].mxu1 }
  0xfb   :  { %v261_v24 = vpop.f32.mrb[3].mxu1  ;;  %v1974_v33 = vmul.f32 -1.442695, %v263_v32  ;;  %v157_v62 = vpop.f32.mrb[0].mxu0 }
  0xfc   :  { %2131 = vtanh.f32 %v2465_v22  ;;  %v1975_v59 = vmul.f32 -1.442695, %v2465_v22  ;;  %v159_v63 = vpop.f32.mrb[1].mxu0 }
  0xfd   :  { %2133 = vpow2.f32 %v1974_v33  ;;  %v161_v6 = vpop.f32.mrb[2].mxu0 }
  0xfe   :  { %v162_v10 = vpop.f32.mrb[3].mxu0 }
 0x106   :  { %v2132_v25 = vpop.eup %2131 }
 0x107   :  { %280 = vrot.lane.b32.xlu0 %v2132_v25, %s2375_s8  ;;  %v2134_v34 = vpop.eup %2133 }
 0x108   :  { %v271_v35 = vadd.f32 1.0, %v2134_v34 }
 0x10a   :  { %2135 = vrcp.f32 %v271_v35 }
 0x10b   :  { %470 = vperm.xlu0 %2093, %v1988_v26  }
 0x114   :  { %v2136_v36 = vpop.eup %2135 }
 0x115   :  { %v278_v54 = vmul.f32 0.0, %v2136_v36 }
 0x179   :  { %v281_v37 = vpop.permute.xlu0 %280 }
 0x17a   :  { %v283_v38 = vmul.f32 %v2136_v36, %v281_v37 }
 0x17c   :  { %285 = vrot.lane.b32.xlu1 %v283_v38, %s2375_s8 }
 0x18a   :  { %v471_v29 = vpop.permute.xlu0 %470 }
 0x18b   :  { %v474_v31 = vmul.f32 %v471_v29, %v2455_v14 }
 0x18d   :  { %v476_v35 = vadd.f32 %v474_v31, %v2462_v18 }
 0x1ee   :  { %v286_v56 = vpop.permute.xlu1 %285 }
 0x1ef   :  { %v2541_v57 = vadd.f32 %v286_v56, %v278_v54  ;;  %v2580_v54 = vrot.slane %v1957_v17, %v2472_v27 }
 0x1f1   :  { %2137 = vtanh.f32 %v2541_v57 }
 0x1f2   :  { %2139 = vpow2.f32 %v1975_v59  ;;  %v473_v59 = vmul.f32 %v471_v29, %v2475_v28 }
 0x1fb   :  { %v2138_v58 = vpop.eup %2137 }
 0x1fc   :  { %291 = vrot.lane.b32.xlu1 %v2138_v58, %s2375_s8  ;;  %v2140_v60 = vpop.eup %2139 }
 0x1fd   :  { %v272_v61 = vadd.f32 1.0, %v2140_v60  ;;  %v475_v60 = vadd.f32 %v473_v59, %v2479_v30 }
 0x1ff   :  { %2141 = vrcp.f32 %v272_v61 }
 0x209   :  { %v2142_v11 = vpop.eup %2141 }
 0x26e   :  { %v292_v13 = vpop.permute.xlu1 %291 }
 0x26f   :  { %v294_v15 = vmul.f32 %v2142_v11, %v292_v13 }
 0x271   :  { %v295_v16 = vpack.c.bf16 %v294_v15, %v294_v15 }
 0x273   :  { %1984 = vmatmul.mubr.msk.bf16.vlgmr.msra.gmra.mrb[4].mxu0 %vm119_vm0, %v295_v16 }
 0x274   :  { %478 = vmatpush1.bf16.msra.mxu0 %v2422_v2  ;;  %509 = vmatprep.mubr.bf16.mxu0 %v2374_v0 }
 0x275   :  { %479 = vmatprep.subr.bf16.mxu0 %v2425_v3 }
 0x278   :  { %480 = vmatpush1.bf16.msra.mxu0 %v2428_v4 }
 0x279   :  { %481 = vmatprep.subr.bf16.mxu0 %v2431_v5 }
 0x27c   :  { %482 = vmatpush1.bf16.msra.mxu0 %v2436_v7 }
 0x27d   :  { %483 = vmatprep.subr.bf16.mxu0 %v2438_v8 }
 0x280   :  { %484 = vmatpush1.bf16.msra.mxu0 %v2442_v9 }
 0x281   :  { %631 = vmatprep.subr.bf16.mxu0 %v2483_v39 }
 0x283   :  { %1989 = vmatmul.mubr.msk.bf16.vlgmr.msra.gmra.mrb[8].mxu0 %vm119_vm0, %v295_v16 }
 0x284   :  { %632 = vmatpush1.bf16.msra.mxu0 %v2485_v40  ;;  %663 = vmatprep.mubr.bf16.mxu0 %v2374_v0 }
 0x285   :  { %633 = vmatprep.subr.bf16.mxu0 %v2487_v41 }
 0x288   :  { %634 = vmatpush1.bf16.msra.mxu0 %v2492_v42 }
 0x289   :  { %635 = vmatprep.subr.bf16.mxu0 %v2496_v43 }
 0x28c   :  { %636 = vmatpush1.bf16.msra.mxu0 %v2500_v44 }
 0x28d   :  { %637 = vmatprep.subr.bf16.mxu0 %v2504_v45 }
 0x290   :  { %638 = vmatpush1.bf16.msra.mxu0 %v2508_v46 }
 0x291   :  { %760 = vmatprep.subr.bf16.mxu0 %v2512_v47 }
 0x346   :  { %v382_v19 = vpop.f32.mrb[4].mxu0 }
 0x347   :  { %v383_v21 = vadd.f32 %v382_v19, %v157_v62  ;;  %v384_v22 = vpop.f32.mrb[5].mxu0 }
 0x348   :  { %v385_v23 = vadd.f32 %v384_v22, %v159_v63  ;;  %v386_v24 = vpop.f32.mrb[6].mxu0 }
 0x349   :  { %v387_v25 = vpop.f32.mrb[7].mxu0  ;;  %v389_v56 = vadd.f32 %v383_v21, %v2580_v54 }
 0x34a   :  { %v390_v26 = vadd.f32 %v385_v23, %v2572_v20 }
 0x34b   :  { %v1985_v58 = vmul.f32 -1.442695, %v389_v56 }
 0x34c   :  { %2143 = vtanh.f32 %v390_v26 }
 0x356   :  { %v2144_v32 = vpop.eup %2143  ;;  %v511_v33 = vpop.f32.mrb[8].mxu0 }
 0x357   :  { %v513_v34 = vpop.f32.mrb[9].mxu0  ;;  %406 = vrot.lane.b32.xlu1 %v2144_v32, %s2375_s8  ;;  %v518_v62 = vadd.f32 %v511_v33, %v475_v60  ;;  %v1996_v33 = vld [vmem:[%s2969_s0 + $0x4] sm:$0x3] }
 0x358   :  { %v515_v12 = vpop.f32.mrb[10].mxu0  ;;  %v519_v37 = vadd.f32 %v513_v34, %v476_v35  ;;  %v1986_v34 = vmul.f32 -1.442695, %v390_v26 }
 0x359   :  { %v516_v36 = vpop.f32.mrb[11].mxu0  ;;  %v1990_v6 = vmul.f32 -1.442695, %v518_v62 }
 0x35a   :  { %2145 = vtanh.f32 %v519_v37  ;;  %v1991_v36 = vmul.f32 -1.442695, %v519_v37 }
 0x35b   :  { %2147 = vpow2.f32 %v1985_v58 }
 0x364   :  { %v2146_v38 = vpop.eup %2145 }
 0x365   :  { %535 = vrot.lane.b32.xlu0 %v2146_v38, %s2375_s8  ;;  %v2148_v61 = vpop.eup %2147 }
 0x366   :  { %v397_v63 = vadd.f32 1.0, %v2148_v61 }
 0x368   :  { %2149 = vrcp.f32 %v397_v63 }
 0x369   :  { %2151 = vpow2.f32 %v1990_v6 }
 0x372   :  { %v2150_v10 = vpop.eup %2149 }
 0x373   :  { %v2152_v13 = vpop.eup %2151  ;;  %v404_v21 = vmul.f32 0.0, %v2150_v10 }
 0x374   :  { %v526_v27 = vadd.f32 1.0, %v2152_v13 }
 0x376   :  { %2153 = vrcp.f32 %v526_v27 }
 0x380   :  { %v2154_v16 = vpop.eup %2153 }
 0x381   :  { %v533_v25 = vmul.f32 %v2154_v16, %v2541_v57 }
 0x3c9   :  { %v407_v11 = vpop.permute.xlu1 %406 }
 0x3ca   :  { %v409_v15 = vmul.f32 %v2150_v10, %v407_v11 }
 0x3cc   :  { %411 = vrot.lane.b32.xlu1 %v409_v15, %s2375_s8 }
 0x3d7   :  { %v536_v17 = vpop.permute.xlu0 %535 }
 0x3d8   :  { %v538_v19 = vmul.f32 %v2154_v16, %v536_v17 }
 0x3da   :  { %540 = vrot.lane.b32.xlu0 %v538_v19, %s2375_s8 }
 0x43e   :  { %v412_v22 = vpop.permute.xlu1 %411 }
 0x43f   :  { %v2587_v23 = vadd.f32 %v412_v22, %v404_v21 }
 0x441   :  { %2155 = vtanh.f32 %v2587_v23 }
 0x44b   :  { %v2156_v24 = vpop.eup %2155 }
 0x44c   :  { %417 = vrot.lane.b32.xlu1 %v2156_v24, %s2375_s8  ;;  %v541_v29 = vpop.permute.xlu0 %540 }
 0x44d   :  { %v2592_v31 = vadd.f32 %v541_v29, %v533_v25 }
 0x44f   :  { %2157 = vtanh.f32 %v2592_v31 }
 0x450   :  { %676 = vperm.xlu1 %2094, %v1996_v33   ;;  %2159 = vpow2.f32 %v1986_v34 }
 0x459   :  { %v2158_v32 = vpop.eup %2157 }
 0x45a   :  { %546 = vrot.lane.b32.xlu0 %v2158_v32, %s2375_s8  ;;  %v2160_v35 = vpop.eup %2159 }
 0x45b   :  { %v398_v12 = vadd.f32 1.0, %v2160_v35 }
 0x45d   :  { %2161 = vrcp.f32 %v398_v12 }
 0x45e   :  { %2163 = vpow2.f32 %v1991_v36 }
 0x467   :  { %v2162_v57 = vpop.eup %2161 }
 0x468   :  { %v2164_v56 = vpop.eup %2163 }
 0x469   :  { %v527_v60 = vadd.f32 1.0, %v2164_v56 }
 0x46b   :  { %2165 = vrcp.f32 %v527_v60 }
 0x475   :  { %v2166_v26 = vpop.eup %2165 }
 0x4be   :  { %v418_v38 = vpop.permute.xlu1 %417 }
 0x4bf   :  { %v420_v58 = vmul.f32 %v2162_v57, %v418_v38 }
 0x4c1   :  { %v421_v59 = vpack.c.bf16 %v420_v58, %v420_v58 }
 0x4c3   :  { %1987 = vmatmul.mubr.msk.bf16.vlgmr.msra.gmra.mrb[4].mxu1 %vm119_vm0, %v421_v59 }
 0x4c4   :  { %555 = vmatpush1.bf16.msra.mxu1 %v2516_v48  ;;  %586 = vmatprep.mubr.bf16.mxu1 %v2374_v0 }
 0x4c5   :  { %556 = vmatprep.subr.bf16.mxu1 %v2520_v49 }
 0x4c8   :  { %557 = vmatpush1.bf16.msra.mxu1 %v2525_v50 }
 0x4c9   :  { %558 = vmatprep.subr.bf16.mxu1 %v2529_v51 }
 0x4cc   :  { %559 = vmatpush1.bf16.msra.mxu1 %v2532_v52  ;;  %v547_v37 = vpop.permute.xlu0 %546 }
 0x4cd   :  { %560 = vmatprep.subr.bf16.mxu1 %v2535_v53  ;;  %v549_v61 = vmul.f32 %v2166_v26, %v547_v37 }
 0x4cf   :  { %v550_v62 = vpack.c.bf16 %v549_v61, %v549_v61  ;;  %v677_v22 = vpop.permute.xlu1 %676 }
 0x4d0   :  { %561 = vmatpush1.bf16.msra.mxu1 %v2539_v55  ;;  %v680_v24 = vmul.f32 %v677_v22, %v2455_v14  ;;  %v679_v56 = vmul.f32 %v677_v22, %v2475_v28  ;;  %v2004_v22 = vld [vmem:[%s2969_s0 + $0x6] sm:$0x3] }
 0x4d1   :  { %683 = vmatprep.subr.bf16.mxu1 %v2420_v1 }
 0x4d2   :  { %v682_v32 = vadd.f32 %v680_v24, %v2462_v18  ;;  %v681_v58 = vadd.f32 %v679_v56, %v2479_v30 }
 0x4d3   :  { %1992 = vmatmul.mubr.msk.bf16.vlgmr.msra.gmra.mrb[8].mxu1 %vm119_vm0, %v550_v62 }
 0x4d4   :  { %684 = vmatpush1.bf16.msra.mxu1 %v2422_v2  ;;  %715 = vmatprep.mubr.bf16.mxu1 %v2374_v0 }
 0x4d5   :  { %685 = vmatprep.subr.bf16.mxu1 %v2425_v3 }
 0x4d8   :  { %686 = vmatpush1.bf16.msra.mxu1 %v2428_v4 }
 0x4d9   :  { %687 = vmatprep.subr.bf16.mxu1 %v2431_v5 }
 0x4dc   :  { %688 = vmatpush1.bf16.msra.mxu1 %v2436_v7 }
 0x4dd   :  { %689 = vmatprep.subr.bf16.mxu1 %v2438_v8 }
 0x4e0   :  { %690 = vmatpush1.bf16.msra.mxu1 %v2442_v9 }
 0x4e1   :  { %837 = vmatprep.subr.bf16.mxu1 %v2483_v39 }
 0x4e3   :  { %1997 = vmatmul.mubr.msk.bf16.vlgmr.msra.gmra.mrb[12].mxu1 %vm119_vm0, %v550_v62 }
 0x4e4   :  { %838 = vmatpush1.bf16.msra.mxu1 %v2485_v40  ;;  %869 = vmatprep.mubr.bf16.mxu1 %v2374_v0 }
 0x4e5   :  { %839 = vmatprep.subr.bf16.mxu1 %v2487_v41 }
 0x4e8   :  { %840 = vmatpush1.bf16.msra.mxu1 %v2492_v42 }
 0x4e9   :  { %841 = vmatprep.subr.bf16.mxu1 %v2496_v43 }
 0x4ec   :  { %842 = vmatpush1.bf16.msra.mxu1 %v2500_v44 }
 0x4ed   :  { %843 = vmatprep.subr.bf16.mxu1 %v2504_v45 }
 0x4f0   :  { %844 = vmatpush1.bf16.msra.mxu1 %v2508_v46 }
 0x4f1   :  { %966 = vmatprep.subr.bf16.mxu1 %v2512_v47 }
 0x596   :  { %v459_v63 = vpop.f32.mrb[4].mxu1 }
 0x597   :  { %v461_v6 = vpop.f32.mrb[5].mxu1 }
 0x598   :  { %v463_v10 = vpop.f32.mrb[6].mxu1 }
 0x599   :  { %v464_v11 = vpop.f32.mrb[7].mxu1 }
 0x5a6   :  { %v588_v13 = vpop.f32.mrb[8].mxu1 }
 0x5a7   :  { %v589_v15 = vadd.f32 %v588_v13, %v459_v63  ;;  %v590_v27 = vpop.f32.mrb[9].mxu1 }
 0x5a8   :  { %v591_v16 = vadd.f32 %v590_v27, %v461_v6  ;;  %v592_v17 = vpop.f32.mrb[10].mxu1 }
 0x5a9   :  { %v593_v19 = vpop.f32.mrb[11].mxu1  ;;  %v595_v57 = vadd.f32 %v589_v15, %v2580_v54 }
 0x5aa   :  { %v596_v21 = vadd.f32 %v591_v16, %v2572_v20 }
 0x5ab   :  { %v1993_v38 = vmul.f32 -1.442695, %v595_v57 }
 0x5ac   :  { %2167 = vtanh.f32 %v596_v21 }
 0x5b6   :  { %v2168_v25 = vpop.eup %2167  ;;  %v717_v29 = vpop.f32.mrb[12].mxu1 }
 0x5b7   :  { %v719_v33 = vpop.f32.mrb[13].mxu1  ;;  %612 = vrot.lane.b32.xlu0 %v2168_v25, %s2375_s8  ;;  %v724_v60 = vadd.f32 %v717_v29, %v681_v58 }
 0x5b8   :  { %v721_v34 = vpop.f32.mrb[14].mxu1  ;;  %v725_v12 = vadd.f32 %v719_v33, %v682_v32  ;;  %v1994_v32 = vmul.f32 -1.442695, %v596_v21 }
 0x5b9   :  { %v722_v35 = vpop.f32.mrb[15].mxu1  ;;  %v1998_v37 = vmul.f32 -1.442695, %v724_v60 }
 0x5ba   :  { %2169 = vtanh.f32 %v725_v12  ;;  %v1999_v35 = vmul.f32 -1.442695, %v725_v12 }
 0x5bb   :  { %2171 = vpow2.f32 %v1993_v38 }
 0x5c4   :  { %v2170_v36 = vpop.eup %2169 }
 0x5c5   :  { %741 = vrot.lane.b32.xlu1 %v2170_v36, %s2375_s8  ;;  %v2172_v59 = vpop.eup %2171 }
 0x5c6   :  { %v603_v26 = vadd.f32 1.0, %v2172_v59 }
 0x5c8   :  { %2173 = vrcp.f32 %v603_v26 }
 0x5c9   :  { %2175 = vpow2.f32 %v1998_v37 }
 0x5d2   :  { %v2174_v61 = vpop.eup %2173 }
 0x5d3   :  { %v2176_v63 = vpop.eup %2175  ;;  %v610_v27 = vmul.f32 %v2174_v61, %v2587_v23 }
 0x5d4   :  { %v732_v10 = vadd.f32 1.0, %v2176_v63 }
 0x5d6   :  { %2177 = vrcp.f32 %v732_v10 }
 0x5e0   :  { %v2178_v11 = vpop.eup %2177 }
 0x5e1   :  { %v739_v24 = vmul.f32 %v2178_v11, %v2592_v31 }
 0x629   :  { %v613_v62 = vpop.permute.xlu0 %612 }
 0x62a   :  { %v615_v6 = vmul.f32 %v2174_v61, %v613_v62 }
 0x62c   :  { %617 = vrot.lane.b32.xlu0 %v615_v6, %s2375_s8 }
 0x637   :  { %v742_v13 = vpop.permute.xlu1 %741 }
 0x638   :  { %v744_v15 = vmul.f32 %v2178_v11, %v742_v13 }
 0x63a   :  { %746 = vrot.lane.b32.xlu1 %v744_v15, %s2375_s8 }
 0x69e   :  { %v618_v16 = vpop.permute.xlu0 %617 }
 0x69f   :  { %v2640_v17 = vadd.f32 %v618_v16, %v610_v27 }
 0x6a1   :  { %2179 = vtanh.f32 %v2640_v17 }
 0x6ab   :  { %v2180_v19 = vpop.eup %2179 }
 0x6ac   :  { %623 = vrot.lane.b32.xlu0 %v2180_v19, %s2375_s8  ;;  %v747_v25 = vpop.permute.xlu1 %746 }
 0x6ad   :  { %v2648_v29 = vadd.f32 %v747_v25, %v739_v24 }
 0x6af   :  { %2181 = vtanh.f32 %v2648_v29 }
 0x6b0   :  { %882 = vperm.xlu0 %2093, %v2004_v22   ;;  %2183 = vpow2.f32 %v1994_v32 }
 0x6b9   :  { %v2182_v23 = vpop.eup %2181 }
 0x6ba   :  { %752 = vrot.lane.b32.xlu1 %v2182_v23, %s2375_s8  ;;  %v2184_v33 = vpop.eup %2183 }
 0x6bb   :  { %v604_v34 = vadd.f32 1.0, %v2184_v33 }
 0x6bd   :  { %2185 = vrcp.f32 %v604_v34 }
 0x6be   :  { %2187 = vpow2.f32 %v1999_v35 }
 0x6c7   :  { %v2186_v36 = vpop.eup %2185 }
 0x6c8   :  { %v2188_v38 = vpop.eup %2187 }
 0x6c9   :  { %v733_v58 = vadd.f32 1.0, %v2188_v38 }
 0x6cb   :  { %2189 = vrcp.f32 %v733_v58 }
 0x6d5   :  { %v2190_v21 = vpop.eup %2189 }
 0x71e   :  { %v624_v57 = vpop.permute.xlu0 %623 }
 0x71f   :  { %v626_v31 = vmul.f32 %v2186_v36, %v624_v57 }
 0x721   :  { %v627_v56 = vpack.c.bf16 %v626_v31, %v626_v31 }
 0x723   :  { %1995 = vmatmul.mubr.msk.bf16.vlgmr.msra.gmra.mrb[12].mxu0 %vm119_vm0, %v627_v56 }
 0x724   :  { %761 = vmatpush1.bf16.msra.mxu0 %v2516_v48  ;;  %792 = vmatprep.mubr.bf16.mxu0 %v2374_v0 }
 0x725   :  { %762 = vmatprep.subr.bf16.mxu0 %v2520_v49 }
 0x728   :  { %763 = vmatpush1.bf16.msra.mxu0 %v2525_v50 }
 0x729   :  { %764 = vmatprep.subr.bf16.mxu0 %v2529_v51 }
 0x72c   :  { %765 = vmatpush1.bf16.msra.mxu0 %v2532_v52  ;;  %v753_v12 = vpop.permute.xlu1 %752 }
 0x72d   :  { %766 = vmatprep.subr.bf16.mxu0 %v2535_v53  ;;  %v755_v59 = vmul.f32 %v2190_v21, %v753_v12 }
 0x72f   :  { %v756_v60 = vpack.c.bf16 %v755_v59, %v755_v59  ;;  %v883_v16 = vpop.permute.xlu0 %882 }
 0x730   :  { %767 = vmatpush1.bf16.msra.mxu0 %v2539_v55  ;;  %v886_v19 = vmul.f32 %v883_v16, %v2455_v14  ;;  %v885_v38 = vmul.f32 %v883_v16, %v2475_v28  ;;  %v2012_v16 = vld [vmem:[%s2969_s0 + $0x8] sm:$0x3] }
 0x731   :  { %889 = vmatprep.subr.bf16.mxu0 %v2420_v1 }
 0x732   :  { %v888_v23 = vadd.f32 %v886_v19, %v2462_v18  ;;  %v887_v31 = vadd.f32 %v885_v38, %v2479_v30 }
 0x733   :  { %2000 = vmatmul.mubr.msk.bf16.vlgmr.msra.gmra.mrb[16].mxu0 %vm119_vm0, %v756_v60 }
 0x734   :  { %890 = vmatpush1.bf16.msra.mxu0 %v2422_v2  ;;  %921 = vmatprep.mubr.bf16.mxu0 %v2374_v0 }
 0x735   :  { %891 = vmatprep.subr.bf16.mxu0 %v2425_v3 }
 0x738   :  { %892 = vmatpush1.bf16.msra.mxu0 %v2428_v4 }
 0x739   :  { %893 = vmatprep.subr.bf16.mxu0 %v2431_v5 }
 0x73c   :  { %894 = vmatpush1.bf16.msra.mxu0 %v2436_v7 }
 0x73d   :  { %895 = vmatprep.subr.bf16.mxu0 %v2438_v8 }
 0x740   :  { %896 = vmatpush1.bf16.msra.mxu0 %v2442_v9 }
 0x741   :  { %1043 = vmatprep.subr.bf16.mxu0 %v2483_v39 }
 0x743   :  { %2005 = vmatmul.mubr.msk.bf16.vlgmr.msra.gmra.mrb[20].mxu0 %vm119_vm0, %v756_v60 }
 0x744   :  { %1044 = vmatpush1.bf16.msra.mxu0 %v2485_v40  ;;  %1075 = vmatprep.mubr.bf16.mxu0 %v2374_v0 }
 0x745   :  { %1045 = vmatprep.subr.bf16.mxu0 %v2487_v41 }
 0x748   :  { %1046 = vmatpush1.bf16.msra.mxu0 %v2492_v42 }
 0x749   :  { %1047 = vmatprep.subr.bf16.mxu0 %v2496_v43 }
 0x74c   :  { %1048 = vmatpush1.bf16.msra.mxu0 %v2500_v44 }
 0x74d   :  { %1049 = vmatprep.subr.bf16.mxu0 %v2504_v45 }
 0x750   :  { %1050 = vmatpush1.bf16.msra.mxu0 %v2508_v46 }
 0x751   :  { %1172 = vmatprep.subr.bf16.mxu0 %v2512_v47 }
 0x7f6   :  { %v665_v26 = vpop.f32.mrb[12].mxu0 }
 0x7f7   :  { %v667_v37 = vpop.f32.mrb[13].mxu0 }
 0x7f8   :  { %v669_v61 = vpop.f32.mrb[14].mxu0 }
 0x7f9   :  { %v670_v62 = vpop.f32.mrb[15].mxu0 }
 0x806   :  { %v794_v63 = vpop.f32.mrb[16].mxu0 }
 0x807   :  { %v795_v6 = vadd.f32 %v794_v63, %v665_v26  ;;  %v796_v10 = vpop.f32.mrb[17].mxu0 }
 0x808   :  { %v797_v11 = vadd.f32 %v796_v10, %v667_v37  ;;  %v798_v13 = vpop.f32.mrb[18].mxu0 }
 0x809   :  { %v799_v15 = vpop.f32.mrb[19].mxu0  ;;  %v801_v36 = vadd.f32 %v795_v6, %v2580_v54 }
 0x80a   :  { %v802_v27 = vadd.f32 %v797_v11, %v2572_v20 }
 0x80b   :  { %v2001_v57 = vmul.f32 -1.442695, %v801_v36 }
 0x80c   :  { %2191 = vtanh.f32 %v802_v27 }
 0x816   :  { %v2192_v22 = vpop.eup %2191  ;;  %v923_v24 = vpop.f32.mrb[20].mxu0 }
 0x817   :  { %v925_v25 = vpop.f32.mrb[21].mxu0  ;;  %818 = vrot.lane.b32.xlu1 %v2192_v22, %s2375_s8  ;;  %v930_v58 = vadd.f32 %v923_v24, %v887_v31 }
 0x818   :  { %v927_v32 = vpop.f32.mrb[22].mxu0  ;;  %v931_v34 = vadd.f32 %v925_v25, %v888_v23  ;;  %v2002_v25 = vmul.f32 -1.442695, %v802_v27 }
 0x819   :  { %v928_v33 = vpop.f32.mrb[23].mxu0  ;;  %v2006_v12 = vmul.f32 -1.442695, %v930_v58 }
 0x81a   :  { %2193 = vtanh.f32 %v931_v34  ;;  %v2007_v33 = vmul.f32 -1.442695, %v931_v34 }
 0x81b   :  { %2195 = vpow2.f32 %v2001_v57 }
 0x824   :  { %v2194_v35 = vpop.eup %2193 }
 0x825   :  { %947 = vrot.lane.b32.xlu0 %v2194_v35, %s2375_s8  ;;  %v2196_v56 = vpop.eup %2195 }
 0x826   :  { %v809_v21 = vadd.f32 1.0, %v2196_v56 }
 0x828   :  { %2197 = vrcp.f32 %v809_v21 }
 0x829   :  { %2199 = vpow2.f32 %v2006_v12 }
 0x832   :  { %v2198_v59 = vpop.eup %2197 }
 0x833   :  { %v2200_v26 = vpop.eup %2199  ;;  %v816_v10 = vmul.f32 %v2198_v59, %v2640_v17 }
 0x834   :  { %v938_v61 = vadd.f32 1.0, %v2200_v26 }
 0x836   :  { %2201 = vrcp.f32 %v938_v61 }
 0x840   :  { %v2202_v62 = vpop.eup %2201 }
 0x841   :  { %v945_v19 = vmul.f32 %v2202_v62, %v2648_v29 }
 0x889   :  { %v819_v60 = vpop.permute.xlu1 %818 }
 0x88a   :  { %v821_v37 = vmul.f32 %v2198_v59, %v819_v60 }
 0x88c   :  { %823 = vrot.lane.b32.xlu1 %v821_v37, %s2375_s8 }
 0x897   :  { %v948_v63 = vpop.permute.xlu0 %947 }
 0x898   :  { %v950_v6 = vmul.f32 %v2202_v62, %v948_v63 }
 0x89a   :  { %952 = vrot.lane.b32.xlu0 %v950_v6, %s2375_s8 }
 0x8fe   :  { %v824_v11 = vpop.permute.xlu1 %823 }
 0x8ff   :  { %v2693_v13 = vadd.f32 %v824_v11, %v816_v10 }
 0x901   :  { %2203 = vtanh.f32 %v2693_v13 }
 0x90b   :  { %v2204_v15 = vpop.eup %2203 }
 0x90c   :  { %829 = vrot.lane.b32.xlu1 %v2204_v15, %s2375_s8  ;;  %v953_v22 = vpop.permute.xlu0 %952 }
 0x90d   :  { %v2701_v24 = vadd.f32 %v953_v22, %v945_v19 }
 0x90f   :  { %2205 = vtanh.f32 %v2701_v24 }
 0x910   :  { %1088 = vperm.xlu1 %2094, %v2012_v16   ;;  %2207 = vpow2.f32 %v2002_v25 }
 0x919   :  { %v2206_v17 = vpop.eup %2205 }
 0x91a   :  { %958 = vrot.lane.b32.xlu0 %v2206_v17, %s2375_s8  ;;  %v2208_v23 = vpop.eup %2207 }
 0x91b   :  { %v810_v32 = vadd.f32 1.0, %v2208_v23 }
 0x91d   :  { %2209 = vrcp.f32 %v810_v32 }
 0x91e   :  { %2211 = vpow2.f32 %v2007_v33 }
 0x927   :  { %v2210_v35 = vpop.eup %2209 }
 0x928   :  { %v2212_v57 = vpop.eup %2211 }
 0x929   :  { %v939_v31 = vadd.f32 1.0, %v2212_v57 }
 0x92b   :  { %2213 = vrcp.f32 %v939_v31 }
 0x935   :  { %v2214_v27 = vpop.eup %2213 }
 0x97e   :  { %v830_v36 = vpop.permute.xlu1 %829 }
 0x97f   :  { %v832_v29 = vmul.f32 %v2210_v35, %v830_v36 }
 0x981   :  { %v833_v38 = vpack.c.bf16 %v832_v29, %v832_v29 }
 0x983   :  { %2003 = vmatmul.mubr.msk.bf16.vlgmr.msra.gmra.mrb[16].mxu1 %vm119_vm0, %v833_v38 }
 0x984   :  { %967 = vmatpush1.bf16.msra.mxu1 %v2516_v48  ;;  %998 = vmatprep.mubr.bf16.mxu1 %v2374_v0 }
 0x985   :  { %968 = vmatprep.subr.bf16.mxu1 %v2520_v49 }
 0x988   :  { %969 = vmatpush1.bf16.msra.mxu1 %v2525_v50 }
 0x989   :  { %970 = vmatprep.subr.bf16.mxu1 %v2529_v51 }
 0x98c   :  { %971 = vmatpush1.bf16.msra.mxu1 %v2532_v52  ;;  %v959_v34 = vpop.permute.xlu0 %958 }
 0x98d   :  { %972 = vmatprep.subr.bf16.mxu1 %v2535_v53  ;;  %v961_v56 = vmul.f32 %v2214_v27, %v959_v34 }
 0x98f   :  { %v962_v58 = vpack.c.bf16 %v961_v56, %v961_v56  ;;  %v1089_v60 = vpop.permute.xlu1 %1088 }
 0x990   :  { %973 = vmatpush1.bf16.msra.mxu1 %v2539_v55  ;;  %v1092_v26 = vmul.f32 %v1089_v60, %v2455_v14  ;;  %v1091_v22 = vmul.f32 %v1089_v60, %v2475_v28 }
 0x991   :  { %1095 = vmatprep.subr.bf16.mxu1 %v2420_v1 }
 0x992   :  { %v1094_v63 = vadd.f32 %v1092_v26, %v2462_v18  ;;  %v1093_v17 = vadd.f32 %v1091_v22, %v2479_v30 }
 0x993   :  { %2008 = vmatmul.mubr.msk.bf16.vlgmr.msra.gmra.mrb[20].mxu1 %vm119_vm0, %v962_v58 }
 0x994   :  { %1096 = vmatpush1.bf16.msra.mxu1 %v2422_v2  ;;  %1127 = vmatprep.mubr.bf16.mxu1 %v2374_v0 }
 0x995   :  { %1097 = vmatprep.subr.bf16.mxu1 %v2425_v3 }
 0x998   :  { %1098 = vmatpush1.bf16.msra.mxu1 %v2428_v4 }
 0x999   :  { %1099 = vmatprep.subr.bf16.mxu1 %v2431_v5 }
 0x99c   :  { %1100 = vmatpush1.bf16.msra.mxu1 %v2436_v7 }
 0x99d   :  { %1101 = vmatprep.subr.bf16.mxu1 %v2438_v8 }
 0x9a0   :  { %1102 = vmatpush1.bf16.msra.mxu1 %v2442_v9 }
 0x9a1   :  { %1249 = vmatprep.subr.bf16.mxu1 %v2483_v39 }
 0x9a3   :  { %2013 = vmatmul.mubr.msk.bf16.vlgmr.msra.gmra.mrb[24].mxu1 %vm119_vm0, %v962_v58 }
 0x9a4   :  { %1250 = vmatpush1.bf16.msra.mxu1 %v2485_v40  ;;  %1281 = vmatprep.mubr.bf16.mxu1 %v2374_v0 }
 0x9a5   :  { %1251 = vmatprep.subr.bf16.mxu1 %v2487_v41 }
 0x9a8   :  { %1252 = vmatpush1.bf16.msra.mxu1 %v2492_v42 }
 0x9a9   :  { %1253 = vmatprep.subr.bf16.mxu1 %v2496_v43 }
 0x9ac   :  { %1254 = vmatpush1.bf16.msra.mxu1 %v2500_v44 }
 0x9ad   :  { %1255 = vmatprep.subr.bf16.mxu1 %v2504_v45 }
 0x9b0   :  { %1256 = vmatpush1.bf16.msra.mxu1 %v2508_v46 }
 0x9b1   :  { %1378 = vmatprep.subr.bf16.mxu1 %v2512_v47 }
 0xa56   :  { %v871_v1 = vpop.f32.mrb[16].mxu1 }
 0xa57   :  { %v873_v2 = vpop.f32.mrb[17].mxu1 }
 0xa58   :  { %v875_v3 = vpop.f32.mrb[18].mxu1 }
 0xa59   :  { %v876_v4 = vpop.f32.mrb[19].mxu1  ;;  %v2020_v3 = vld [vmem:[%s2969_s0 + $0xa] sm:$0x3] }
 0xa66   :  { %v1000_v5 = vpop.f32.mrb[20].mxu1 }
 0xa67   :  { %v1001_v7 = vadd.f32 %v1000_v5, %v871_v1  ;;  %v1002_v8 = vpop.f32.mrb[21].mxu1 }
 0xa68   :  { %v1003_v9 = vadd.f32 %v1002_v8, %v873_v2  ;;  %v1004_v21 = vpop.f32.mrb[22].mxu1 }
 0xa69   :  { %v1005_v12 = vpop.f32.mrb[23].mxu1  ;;  %v1007_v16 = vadd.f32 %v1001_v7, %v2580_v54 }
 0xa6a   :  { %v1008_v59 = vadd.f32 %v1003_v9, %v2572_v20 }
 0xa6b   :  { %v2009_v19 = vmul.f32 -1.442695, %v1007_v16 }
 0xa6c   :  { %2215 = vtanh.f32 %v1008_v59  ;;  %v2010_v8 = vmul.f32 -1.442695, %v1008_v59 }
 0xa76   :  { %v2216_v37 = vpop.eup %2215  ;;  %v1129_v61 = vpop.f32.mrb[24].mxu1 }
 0xa77   :  { %v1131_v62 = vpop.f32.mrb[25].mxu1  ;;  %1024 = vrot.lane.b32.xlu0 %v2216_v37, %s2375_s8  ;;  %v1136_v23 = vadd.f32 %v1129_v61, %v1093_v17 }
 0xa78   :  { %v1133_v6 = vpop.f32.mrb[26].mxu1  ;;  %v1137_v11 = vadd.f32 %v1131_v62, %v1094_v63 }
 0xa79   :  { %v1134_v10 = vpop.f32.mrb[27].mxu1  ;;  %v2014_v33 = vmul.f32 -1.442695, %v1136_v23 }
 0xa7a   :  { %2217 = vtanh.f32 %v1137_v11  ;;  %v2015_v12 = vmul.f32 -1.442695, %v1137_v11  ;;  %v2767_v10 = vld [vmem:[#allocation2 + $0x4] ss:$8 sps:$4 sm:$0xff]   ;;  %v2790_v11 = vld [vmem:[#allocation2 + $0x30] ss:$8 sps:$4 sm:$0xff]  }
 0xa7b   :  { %2219 = vpow2.f32 %v2009_v19 }
 0xa84   :  { %v2218_v15 = vpop.eup %2217 }
 0xa85   :  { %1153 = vrot.lane.b32.xlu1 %v2218_v15, %s2375_s8  ;;  %v2220_v25 = vpop.eup %2219 }
 0xa86   :  { %v1015_v32 = vadd.f32 1.0, %v2220_v25 }
 0xa88   :  { %2221 = vrcp.f32 %v1015_v32 }
 0xa89   :  { %2223 = vpow2.f32 %v2014_v33 }
 0xa92   :  { %v2222_v35 = vpop.eup %2221 }
 0xa93   :  { %v2224_v57 = vpop.eup %2223  ;;  %v1022_v56 = vmul.f32 %v2222_v35, %v2693_v13 }
 0xa94   :  { %v1144_v38 = vadd.f32 1.0, %v2224_v57 }
 0xa96   :  { %2225 = vrcp.f32 %v1144_v38 }
 0xaa0   :  { %v2226_v31 = vpop.eup %2225 }
 0xaa1   :  { %v1151_v4 = vmul.f32 %v2226_v31, %v2701_v24 }
 0xae9   :  { %v1025_v36 = vpop.permute.xlu0 %1024 }
 0xaea   :  { %v1027_v29 = vmul.f32 %v2222_v35, %v1025_v36 }
 0xaec   :  { %1029 = vrot.lane.b32.xlu0 %v1027_v29, %s2375_s8 }
 0xaf7   :  { %v1154_v27 = vpop.permute.xlu1 %1153 }
 0xaf8   :  { %v1156_v34 = vmul.f32 %v2226_v31, %v1154_v27 }
 0xafa   :  { %1158 = vrot.lane.b32.xlu1 %v1156_v34, %s2375_s8 }
 0xb5e   :  { %v1030_v58 = vpop.permute.xlu0 %1029 }
 0xb5f   :  { %v2746_v1 = vadd.f32 %v1030_v58, %v1022_v56 }
 0xb61   :  { %2227 = vtanh.f32 %v2746_v1 }
 0xb6b   :  { %v2228_v2 = vpop.eup %2227 }
 0xb6c   :  { %1035 = vrot.lane.b32.xlu0 %v2228_v2, %s2375_s8  ;;  %v1159_v5 = vpop.permute.xlu1 %1158 }
 0xb6d   :  { %v2754_v7 = vadd.f32 %v1159_v5, %v1151_v4 }
 0xb6f   :  { %2229 = vtanh.f32 %v2754_v7 }
 0xb70   :  { %1294 = vperm.xlu0 %2093, %v2020_v3   ;;  %2231 = vpow2.f32 %v2010_v8 }
 0xb79   :  { %v2230_v13 = vpop.eup %2229 }
 0xb7a   :  { %1164 = vrot.lane.b32.xlu1 %v2230_v13, %s2375_s8  ;;  %v2232_v9 = vpop.eup %2231 }
 0xb7b   :  { %v1016_v21 = vadd.f32 1.0, %v2232_v9 }
 0xb7d   :  { %2233 = vrcp.f32 %v1016_v21 }
 0xb7e   :  { %2235 = vpow2.f32 %v2015_v12 }
 0xb87   :  { %v2234_v60 = vpop.eup %2233 }
 0xb88   :  { %v2236_v37 = vpop.eup %2235 }
 0xb89   :  { %v1145_v62 = vadd.f32 1.0, %v2236_v37 }
 0xb8b   :  { %2237 = vrcp.f32 %v1145_v62 }
 0xb95   :  { %v2238_v59 = vpop.eup %2237 }
 0xbde   :  { %v1036_v26 = vpop.permute.xlu0 %1035 }
 0xbdf   :  { %v1038_v24 = vmul.f32 %v2234_v60, %v1036_v26 }
 0xbe1   :  { %v1039_v61 = vpack.c.bf16 %v1038_v24, %v1038_v24 }
 0xbe3   :  { %2011 = vmatmul.mubr.msk.bf16.vlgmr.msra.gmra.mrb[24].mxu0 %vm119_vm0, %v1039_v61  ;;  %v2028_v61 = vld [vmem:[%s2969_s0 + $0xc] sm:$0x3] }
 0xbe4   :  { %1173 = vmatpush1.bf16.msra.mxu0 %v2516_v48  ;;  %1204 = vmatprep.mubr.bf16.mxu0 %v2374_v0 }
 0xbe5   :  { %1174 = vmatprep.subr.bf16.mxu0 %v2520_v49  ;;  %v2771_v49 = vld [vmem:[#allocation2] ss:$8 sps:$4 sm:$0xff]  }
 0xbe8   :  { %1175 = vmatpush1.bf16.msra.mxu0 %v2525_v50  ;;  %v2775_v50 = vld [vmem:[#allocation2 + $0x14] ss:$8 sps:$4 sm:$0xff]  }
 0xbe9   :  { %1176 = vmatprep.subr.bf16.mxu0 %v2529_v51  ;;  %v2778_v51 = vld [vmem:[#allocation2 + $0x10] ss:$8 sps:$4 sm:$0xff]  }
 0xbec   :  { %1177 = vmatpush1.bf16.msra.mxu0 %v2532_v52  ;;  %v1165_v63 = vpop.permute.xlu1 %1164  ;;  %v2781_v52 = vld [vmem:[#allocation2 + $0x24] ss:$8 sps:$4 sm:$0xff]  }
 0xbed   :  { %1178 = vmatprep.subr.bf16.mxu0 %v2535_v53  ;;  %v1167_v6 = vmul.f32 %v2238_v59, %v1165_v63  ;;  %v2784_v53 = vld [vmem:[#allocation2 + $0x20] ss:$8 sps:$4 sm:$0xff]  }
 0xbef   :  { %v1168_v48 = vpack.c.bf16 %v1167_v6, %v1167_v6 }
 0xbf0   :  { %1179 = vmatpush1.bf16.msra.mxu0 %v2539_v55  ;;  %v2787_v55 = vld [vmem:[#allocation2 + $0x34] ss:$8 sps:$4 sm:$0xff]  }
 0xbf1   :  { %1301 = vmatprep.subr.bf16.mxu0 %v2767_v10 }
 0xbf3   :  { %2016 = vmatmul.mubr.msk.bf16.vlgmr.msra.gmra.mrb[28].mxu0 %vm119_vm0, %v1168_v48 }
 0xbf4   :  { %1302 = vmatpush1.bf16.msra.mxu0 %v2771_v49  ;;  %1333 = vmatprep.mubr.bf16.mxu0 %v2374_v0 }
 0xbf5   :  { %1303 = vmatprep.subr.bf16.mxu0 %v2775_v50 }
 0xbf8   :  { %1304 = vmatpush1.bf16.msra.mxu0 %v2778_v51 }
 0xbf9   :  { %1305 = vmatprep.subr.bf16.mxu0 %v2781_v52 }
 0xbfc   :  { %1306 = vmatpush1.bf16.msra.mxu0 %v2784_v53 }
 0xbfd   :  { %1307 = vmatprep.subr.bf16.mxu0 %v2787_v55 }
 0xc00   :  { %1308 = vmatpush1.bf16.msra.mxu0 %v2790_v11 }
 0xc01   :  { %1455 = vmatprep.subr.bf16.mxu0 %v2483_v39 }
 0xc03   :  { %2021 = vmatmul.mubr.msk.bf16.vlgmr.msra.gmra.mrb[32].mxu0 %vm119_vm0, %v1168_v48 }
 0xc04   :  { %1456 = vmatpush1.bf16.msra.mxu0 %v2485_v40  ;;  %1487 = vmatprep.mubr.bf16.mxu0 %v2374_v0 }
 0xc05   :  { %1457 = vmatprep.subr.bf16.mxu0 %v2487_v41 }
 0xc08   :  { %1458 = vmatpush1.bf16.msra.mxu0 %v2492_v42 }
 0xc09   :  { %1459 = vmatprep.subr.bf16.mxu0 %v2496_v43 }
 0xc0c   :  { %1460 = vmatpush1.bf16.msra.mxu0 %v2500_v44  ;;  %v1295_v44 = vpop.permute.xlu0 %1294 }
 0xc0d   :  { %1461 = vmatprep.subr.bf16.mxu0 %v2504_v45  ;;  %v1298_v45 = vmul.f32 %v1295_v44, %v2455_v14  ;;  %v1297_v31 = vmul.f32 %v1295_v44, %v2475_v28  ;;  %v2841_v44 = vld [vmem:[#allocation2 + $0x60] ss:$8 sps:$4 sm:$0xff]  }
 0xc0f   :  { %v1299_v27 = vadd.f32 %v1297_v31, %v2479_v30  ;;  %v2343_v31 = vld [vmem:[#allocation2 + $0xa0] ss:$8 sps:$4 sm:$0xff]  }
 0xc10   :  { %1462 = vmatpush1.bf16.msra.mxu0 %v2508_v46 }
 0xc11   :  { %1584 = vmatprep.subr.bf16.mxu0 %v2512_v47  ;;  %v1300_v47 = vadd.f32 %v1298_v45, %v2462_v18  ;;  %v2844_v45 = vld [vmem:[#allocation2 + $0x74] ss:$8 sps:$4 sm:$0xff]  }
 0xcb6   :  { %v1077_v39 = vpop.f32.mrb[24].mxu0 }
 0xcb7   :  { %v1079_v15 = vpop.f32.mrb[25].mxu0 }
 0xcb8   :  { %v1081_v16 = vpop.f32.mrb[26].mxu0 }
 0xcb9   :  { %v1082_v40 = vpop.f32.mrb[27].mxu0 }
 0xcc6   :  { %v1206_v19 = vpop.f32.mrb[28].mxu0 }
 0xcc7   :  { %v1207_v22 = vadd.f32 %v1206_v19, %v1077_v39  ;;  %v1208_v17 = vpop.f32.mrb[29].mxu0 }
 0xcc8   :  { %v1209_v41 = vadd.f32 %v1208_v17, %v1079_v15  ;;  %v1210_v25 = vpop.f32.mrb[30].mxu0 }
 0xcc9   :  { %v1211_v42 = vpop.f32.mrb[31].mxu0  ;;  %v1213_v29 = vadd.f32 %v1207_v22, %v2580_v54  ;;  %v2832_v25 = vld [vmem:[#allocation2 + $0x54] ss:$8 sps:$4 sm:$0xff]  }
 0xcca   :  { %v1214_v43 = vadd.f32 %v1209_v41, %v2572_v20  ;;  %v2828_v41 = vld [vmem:[#allocation2 + $0x40] ss:$8 sps:$4 sm:$0xff]   ;;  %v2835_v42 = vld [vmem:[#allocation2 + $0x50] ss:$8 sps:$4 sm:$0xff]  }
 0xccb   :  { %v2017_v38 = vmul.f32 -1.442695, %v1213_v29  ;;  %v2341_v29 = vld [vmem:[#allocation2 + $0x90] ss:$8 sps:$4 sm:$0xff]  }
 0xccc   :  { %2239 = vtanh.f32 %v1214_v43  ;;  %v2018_v6 = vmul.f32 -1.442695, %v1214_v43  ;;  %v2838_v43 = vld [vmem:[#allocation2 + $0x64] ss:$8 sps:$4 sm:$0xff]  }
 0xcd6   :  { %v2240_v23 = vpop.eup %2239  ;;  %v1335_v46 = vpop.f32.mrb[32].mxu0 }
 0xcd7   :  { %v1337_v32 = vpop.f32.mrb[33].mxu0  ;;  %1230 = vrot.lane.b32.xlu1 %v2240_v23, %s2375_s8  ;;  %v1342_v56 = vadd.f32 %v1335_v46, %v1299_v27  ;;  %v2344_v27 = vld [vmem:[#allocation2 + $0xb4] ss:$8 sps:$4 sm:$0xff]  }
 0xcd8   :  { %v1339_v33 = vpop.f32.mrb[34].mxu0  ;;  %v1343_v36 = vadd.f32 %v1337_v32, %v1300_v47  ;;  %v2847_v32 = vld [vmem:[#allocation2 + $0x70] ss:$8 sps:$4 sm:$0xff]  }
 0xcd9   :  { %v1340_v35 = vpop.f32.mrb[35].mxu0  ;;  %v2022_v2 = vmul.f32 -1.442695, %v1342_v56  ;;  %v2346_v56 = vld [vmem:[#allocation2 + $0x44] ss:$8 sps:$4 sm:$0xff]  }
 0xcda   :  { %2241 = vtanh.f32 %v1343_v36  ;;  %v2023_v15 = vmul.f32 -1.442695, %v1343_v36  ;;  %v2338_v35 = vld [vmem:[#allocation2 + $0x84] ss:$8 sps:$4 sm:$0xff]   ;;  %v2339_v36 = vld [vmem:[#allocation2 + $0x80] ss:$8 sps:$4 sm:$0xff]  }
 0xcdb   :  { %2243 = vpow2.f32 %v2017_v38  ;;  %v2342_v38 = vld [vmem:[#allocation2 + $0xa4] ss:$8 sps:$4 sm:$0xff]  }
 0xce4   :  { %v2242_v57 = vpop.eup %2241 }
 0xce5   :  { %1359 = vrot.lane.b32.xlu0 %v2242_v57, %s2375_s8  ;;  %v2244_v34 = vpop.eup %2243  ;;  %v2340_v57 = vld [vmem:[#allocation2 + $0x94] ss:$8 sps:$4 sm:$0xff]  }
 0xce6   :  { %v1221_v58 = vadd.f32 1.0, %v2244_v34  ;;  %v2345_v34 = vld [vmem:[#allocation2 + $0xb0] ss:$8 sps:$4 sm:$0xff]  }
 0xce8   :  { %2245 = vrcp.f32 %v1221_v58 }
 0xce9   :  { %2247 = vpow2.f32 %v2022_v2 }
 0xcf2   :  { %v2246_v3 = vpop.eup %2245 }
 0xcf3   :  { %v2248_v5 = vpop.eup %2247  ;;  %v1228_v60 = vmul.f32 %v2246_v3, %v2746_v1 }
 0xcf4   :  { %v1350_v8 = vadd.f32 1.0, %v2248_v5 }
 0xcf6   :  { %2249 = vrcp.f32 %v1350_v8 }
 0xd00   :  { %v2250_v9 = vpop.eup %2249 }
 0xd01   :  { %v1357_v62 = vmul.f32 %v2250_v9, %v2754_v7 }
 0xd49   :  { %v1231_v4 = vpop.permute.xlu1 %1230 }
 0xd4a   :  { %v1233_v13 = vmul.f32 %v2246_v3, %v1231_v4 }
 0xd4c   :  { %1235 = vrot.lane.b32.xlu1 %v1233_v13, %s2375_s8 }
 0xd57   :  { %v1360_v21 = vpop.permute.xlu0 %1359 }
 0xd58   :  { %v1362_v12 = vmul.f32 %v2250_v9, %v1360_v21 }
 0xd5a   :  { %1364 = vrot.lane.b32.xlu0 %v1362_v12, %s2375_s8 }
 0xdbe   :  { %v1236_v26 = vpop.permute.xlu1 %1235 }
 0xdbf   :  { %v2815_v37 = vadd.f32 %v1236_v26, %v1228_v60 }
 0xdc1   :  { %2251 = vtanh.f32 %v2815_v37 }
 0xdcb   :  { %v2252_v24 = vpop.eup %2251 }
 0xdcc   :  { %1241 = vrot.lane.b32.xlu1 %v2252_v24, %s2375_s8  ;;  %v1365_v59 = vpop.permute.xlu0 %1364 }
 0xdcd   :  { %v2823_v63 = vadd.f32 %v1365_v59, %v1357_v62 }
 0xdcf   :  { %2253 = vtanh.f32 %v2823_v63 }
 0xdd0   :  { %1500 = vperm.xlu1 %2094, %v2028_v61   ;;  %2255 = vpow2.f32 %v2018_v6 }
 0xdd9   :  { %v2254_v1 = vpop.eup %2253 }
 0xdda   :  { %1370 = vrot.lane.b32.xlu0 %v2254_v1, %s2375_s8  ;;  %v2256_v48 = vpop.eup %2255 }
 0xddb   :  { %v1222_v39 = vadd.f32 1.0, %v2256_v48 }
 0xddd   :  { %2257 = vrcp.f32 %v1222_v39 }
 0xdde   :  { %2259 = vpow2.f32 %v2023_v15 }
 0xde7   :  { %v2258_v16 = vpop.eup %2257 }
 0xde8   :  { %v2260_v19 = vpop.eup %2259 }
 0xde9   :  { %v1351_v17 = vadd.f32 1.0, %v2260_v19 }
 0xdeb   :  { %2261 = vrcp.f32 %v1351_v17 }
 0xdf5   :  { %v2262_v23 = vpop.eup %2261 }
 0xe3e   :  { %v1242_v40 = vpop.permute.xlu1 %1241 }
 0xe3f   :  { %v1244_v7 = vmul.f32 %v2258_v16, %v1242_v40 }
 0xe41   :  { %v1245_v22 = vpack.c.bf16 %v1244_v7, %v1244_v7 }
 0xe43   :  { %2019 = vmatmul.mubr.msk.bf16.vlgmr.msra.gmra.mrb[28].mxu1 %vm119_vm0, %v1245_v22 }
 0xe44   :  { %1379 = vmatpush1.bf16.msra.mxu1 %v2828_v41  ;;  %1410 = vmatprep.mubr.bf16.mxu1 %v2374_v0 }
 0xe45   :  { %1380 = vmatprep.subr.bf16.mxu1 %v2832_v25 }
 0xe48   :  { %1381 = vmatpush1.bf16.msra.mxu1 %v2835_v42 }
 0xe49   :  { %1382 = vmatprep.subr.bf16.mxu1 %v2838_v43 }
 0xe4c   :  { %1383 = vmatpush1.bf16.msra.mxu1 %v2841_v44  ;;  %v1371_v46 = vpop.permute.xlu0 %1370 }
 0xe4d   :  { %1384 = vmatprep.subr.bf16.mxu1 %v2844_v45  ;;  %v1373_v47 = vmul.f32 %v2262_v23, %v1371_v46 }
 0xe4f   :  { %v1374_v33 = vpack.c.bf16 %v1373_v47, %v1373_v47  ;;  %v1501_v26 = vpop.permute.xlu1 %1500 }
 0xe50   :  { %1385 = vmatpush1.bf16.msra.mxu1 %v2847_v32  ;;  %v1504_v24 = vmul.f32 %v1501_v26, %v2455_v14  ;;  %v1503_v19 = vmul.f32 %v1501_v26, %v2475_v28 }
 0xe51   :  { %1507 = vmatprep.subr.bf16.mxu1 %v2767_v10 }
 0xe52   :  { %v1506_v1 = vadd.f32 %v1504_v24, %v2462_v18  ;;  %v1505_v7 = vadd.f32 %v1503_v19, %v2479_v30 }
 0xe53   :  { %2024 = vmatmul.mubr.msk.bf16.vlgmr.msra.gmra.mrb[32].mxu1 %vm119_vm0, %v1374_v33 }
 0xe54   :  { %1508 = vmatpush1.bf16.msra.mxu1 %v2771_v49  ;;  %1539 = vmatprep.mubr.bf16.mxu1 %v2374_v0 }
 0xe55   :  { %1509 = vmatprep.subr.bf16.mxu1 %v2775_v50 }
 0xe58   :  { %1510 = vmatpush1.bf16.msra.mxu1 %v2778_v51 }
 0xe59   :  { %1511 = vmatprep.subr.bf16.mxu1 %v2781_v52 }
 0xe5c   :  { %1512 = vmatpush1.bf16.msra.mxu1 %v2784_v53 }
 0xe5d   :  { %1513 = vmatprep.subr.bf16.mxu1 %v2787_v55 }
 0xe60   :  { %1514 = vmatpush1.bf16.msra.mxu1 %v2790_v11 }
 0xe61   :  { %1661 = vmatprep.subr.bf16.mxu1 %v2338_v35 }
 0xe63   :  { %2029 = vmatmul.mubr.msk.bf16.vlgmr.msra.gmra.mrb[36].mxu1 %vm119_vm0, %v1374_v33 }
 0xe64   :  { %1662 = vmatpush1.bf16.msra.mxu1 %v2339_v36  ;;  %1693 = vmatprep.mubr.bf16.mxu1 %v2374_v0 }
 0xe65   :  { %1663 = vmatprep.subr.bf16.mxu1 %v2340_v57 }
 0xe68   :  { %1664 = vmatpush1.bf16.msra.mxu1 %v2341_v29 }
 0xe69   :  { %1665 = vmatprep.subr.bf16.mxu1 %v2342_v38 }
 0xe6c   :  { %1666 = vmatpush1.bf16.msra.mxu1 %v2343_v31 }
 0xe6d   :  { %1667 = vmatprep.subr.bf16.mxu1 %v2344_v27 }
 0xe70   :  { %1668 = vmatpush1.bf16.msra.mxu1 %v2345_v34 }
 0xe71   :  { %1790 = vmatprep.subr.bf16.mxu1 %v2346_v56 }
 0xf16   :  { %v1283_v58 = vpop.f32.mrb[28].mxu1 }
 0xf17   :  { %v1285_v2 = vpop.f32.mrb[29].mxu1 }
 0xf18   :  { %v1287_v3 = vpop.f32.mrb[30].mxu1 }
 0xf19   :  { %v1288_v4 = vpop.f32.mrb[31].mxu1 }
 0xf26   :  { %v1412_v5 = vpop.f32.mrb[32].mxu1 }
 0xf27   :  { %v1413_v13 = vadd.f32 %v1412_v5, %v1283_v58  ;;  %v1414_v8 = vpop.f32.mrb[33].mxu1 }
 0xf28   :  { %v1415_v9 = vadd.f32 %v1414_v8, %v1285_v2  ;;  %v1416_v21 = vpop.f32.mrb[34].mxu1  ;;  %v2036_v2 = vld [vmem:[%s2969_s0 + $0xe] sm:$0x3] }
 0xf29   :  { %v1417_v12 = vpop.f32.mrb[35].mxu1  ;;  %v1419_v16 = vadd.f32 %v1413_v13, %v2580_v54 }
 0xf2a   :  { %v1420_v60 = vadd.f32 %v1415_v9, %v2572_v20 }
 0xf2b   :  { %v2025_v40 = vmul.f32 -1.442695, %v1419_v16 }
 0xf2c   :  { %2263 = vtanh.f32 %v1420_v60  ;;  %v2026_v13 = vmul.f32 -1.442695, %v1420_v60 }
 0xf36   :  { %v2264_v61 = vpop.eup %2263  ;;  %v1541_v62 = vpop.f32.mrb[36].mxu1 }
 0xf37   :  { %v1543_v59 = vpop.f32.mrb[37].mxu1  ;;  %1436 = vrot.lane.b32.xlu0 %v2264_v61, %s2375_s8  ;;  %v1548_v17 = vadd.f32 %v1541_v62, %v1505_v7 }
 0xf38   :  { %v1545_v6 = vpop.f32.mrb[38].mxu1  ;;  %v1549_v39 = vadd.f32 %v1543_v59, %v1506_v1 }
 0xf39   :  { %v1546_v48 = vpop.f32.mrb[39].mxu1  ;;  %v2030_v46 = vmul.f32 -1.442695, %v1548_v17 }
 0xf3a   :  { %2265 = vtanh.f32 %v1549_v39  ;;  %v2031_v21 = vmul.f32 -1.442695, %v1549_v39 }
 0xf3b   :  { %2267 = vpow2.f32 %v2025_v40 }
 0xf44   :  { %v2266_v15 = vpop.eup %2265 }
 0xf45   :  { %1565 = vrot.lane.b32.xlu1 %v2266_v15, %s2375_s8  ;;  %v2268_v22 = vpop.eup %2267 }
 0xf46   :  { %v1427_v23 = vadd.f32 1.0, %v2268_v22 }
 0xf48   :  { %2269 = vrcp.f32 %v1427_v23 }
 0xf49   :  { %2271 = vpow2.f32 %v2030_v46 }
 0xf52   :  { %v2270_v47 = vpop.eup %2269 }
 0xf53   :  { %v2272_v35 = vpop.eup %2271  ;;  %v1434_v27 = vmul.f32 %v2270_v47, %v2815_v37 }
 0xf54   :  { %v1556_v57 = vadd.f32 1.0, %v2272_v35 }
 0xf56   :  { %2273 = vrcp.f32 %v1556_v57 }
 0xf60   :  { %v2274_v29 = vpop.eup %2273 }
 0xf61   :  { %v1563_v3 = vmul.f32 %v2274_v29, %v2823_v63 }
 0xfa9   :  { %v1437_v33 = vpop.permute.xlu0 %1436 }
 0xfaa   :  { %v1439_v36 = vmul.f32 %v2270_v47, %v1437_v33 }
 0xfac   :  { %1441 = vrot.lane.b32.xlu0 %v1439_v36, %s2375_s8 }
 0xfb7   :  { %v1566_v38 = vpop.permute.xlu1 %1565 }
 0xfb8   :  { %v1568_v31 = vmul.f32 %v2274_v29, %v1566_v38 }
 0xfba   :  { %1570 = vrot.lane.b32.xlu1 %v1568_v31, %s2375_s8 }
0x101e   :  { %v1442_v34 = vpop.permute.xlu0 %1441 }
0x101f   :  { %v2873_v56 = vadd.f32 %v1442_v34, %v1434_v27 }
0x1021   :  { %2275 = vtanh.f32 %v2873_v56 }
0x102b   :  { %v2276_v58 = vpop.eup %2275 }
0x102c   :  { %1447 = vrot.lane.b32.xlu0 %v2276_v58, %s2375_s8  ;;  %v1571_v4 = vpop.permute.xlu1 %1570 }
0x102d   :  { %v2881_v5 = vadd.f32 %v1571_v4, %v1563_v3 }
0x102f   :  { %2277 = vtanh.f32 %v2881_v5 }
0x1030   :  { %1706 = vperm.xlu0 %2093, %v2036_v2   ;;  %2279 = vpow2.f32 %v2026_v13 }
0x1039   :  { %v2278_v37 = vpop.eup %2277 }
0x103a   :  { %1576 = vrot.lane.b32.xlu1 %v2278_v37, %s2375_s8  ;;  %v2280_v8 = vpop.eup %2279 }
0x103b   :  { %v1428_v9 = vadd.f32 1.0, %v2280_v8 }
0x103d   :  { %2281 = vrcp.f32 %v1428_v9 }
0x103e   :  { %2283 = vpow2.f32 %v2031_v21 }
0x1047   :  { %v2282_v12 = vpop.eup %2281 }
0x1048   :  { %v2284_v24 = vpop.eup %2283 }
0x1049   :  { %v1557_v62 = vadd.f32 1.0, %v2284_v24 }
0x104b   :  { %2285 = vrcp.f32 %v1557_v62 }
0x1055   :  { %v2286_v60 = vpop.eup %2285 }
0x109e   :  { %v1448_v26 = vpop.permute.xlu0 %1447 }
0x109f   :  { %v1450_v63 = vmul.f32 %v2282_v12, %v1448_v26 }
0x10a1   :  { %v1451_v61 = vpack.c.bf16 %v1450_v63, %v1450_v63 }
0x10a3   :  { %2027 = vmatmul.mubr.msk.bf16.vlgmr.msra.gmra.mrb[36].mxu0 %vm119_vm0, %v1451_v61 }
0x10a4   :  { %1585 = vmatpush1.bf16.msra.mxu0 %v2828_v41  ;;  %1616 = vmatprep.mubr.bf16.mxu0 %v2374_v0 }
0x10a5   :  { %1586 = vmatprep.subr.bf16.mxu0 %v2832_v25 }
0x10a8   :  { %1587 = vmatpush1.bf16.msra.mxu0 %v2835_v42 }
0x10a9   :  { %1588 = vmatprep.subr.bf16.mxu0 %v2838_v43 }
0x10ac   :  { %1589 = vmatpush1.bf16.msra.mxu0 %v2841_v44  ;;  %v1577_v59 = vpop.permute.xlu1 %1576 }
0x10ad   :  { %1590 = vmatprep.subr.bf16.mxu0 %v2844_v45  ;;  %v1579_v1 = vmul.f32 %v2286_v60, %v1577_v59 }
0x10af   :  { %v1580_v6 = vpack.c.bf16 %v1579_v1, %v1579_v1 }
0x10b0   :  { %1591 = vmatpush1.bf16.msra.mxu0 %v2847_v32 }
0x10b1   :  { %1713 = vmatprep.subr.bf16.mxu0 %v2767_v10 }
0x10b3   :  { %2032 = vmatmul.mubr.msk.bf16.vlgmr.msra.gmra.mrb[40].mxu0 %vm119_vm0, %v1580_v6 }
0x10b4   :  { %1714 = vmatpush1.bf16.msra.mxu0 %v2771_v49  ;;  %1745 = vmatprep.mubr.bf16.mxu0 %v2374_v0 }
0x10b5   :  { %1715 = vmatprep.subr.bf16.mxu0 %v2775_v50 }
0x10b8   :  { %1716 = vmatpush1.bf16.msra.mxu0 %v2778_v51 }
0x10b9   :  { %1717 = vmatprep.subr.bf16.mxu0 %v2781_v52 }
0x10bc   :  { %1718 = vmatpush1.bf16.msra.mxu0 %v2784_v53  ;;  %v1707_v53 = vpop.permute.xlu0 %1706 }
0x10bd   :  { %1719 = vmatprep.subr.bf16.mxu0 %v2787_v55  ;;  %v1710_v55 = vmul.f32 %v1707_v53, %v2455_v14  ;;  %v1709_v14 = vmul.f32 %v1707_v53, %v2475_v28 }
0x10bf   :  { %v1712_v17 = vadd.f32 %v1710_v55, %v2462_v18  ;;  %v1711_v57 = vadd.f32 %v1709_v14, %v2479_v30 }
0x10c0   :  { %1720 = vmatpush1.bf16.msra.mxu0 %v2790_v11 }
0x10c3   :  { %2037 = vmatmul.mubr.msk.bf16.vlgmr.msra.gmra.mrb[44].mxu0 %vm119_vm0, %v1580_v6 }
0x1176   :  { %v1489_v10 = vpop.f32.mrb[36].mxu0 }
0x1177   :  { %v1491_v48 = vpop.f32.mrb[37].mxu0 }
0x1178   :  { %v1493_v39 = vpop.f32.mrb[38].mxu0 }
0x1179   :  { %v1494_v49 = vpop.f32.mrb[39].mxu0 }
0x1186   :  { %v1618_v15 = vpop.f32.mrb[40].mxu0 }
0x1187   :  { %v1619_v16 = vadd.f32 %v1618_v15, %v1489_v10  ;;  %v1620_v40 = vpop.f32.mrb[41].mxu0 }
0x1188   :  { %v1621_v50 = vadd.f32 %v1620_v40, %v1491_v48  ;;  %v1622_v19 = vpop.f32.mrb[42].mxu0 }
0x1189   :  { %v1623_v51 = vpop.f32.mrb[43].mxu0  ;;  %v1625_v35 = vadd.f32 %v1619_v16, %v2580_v54 }
0x118a   :  { %v1626_v52 = vadd.f32 %v1621_v50, %v2572_v20 }
0x118b   :  { %v2033_v36 = vmul.f32 -1.442695, %v1625_v35  ;;  %v1867_v35 = vld [vmem:[%s2972_s3 + $0x20] sm:$0xff] }
0x118c   :  { %2287 = vtanh.f32 %v1626_v52  ;;  %v2034_v63 = vmul.f32 -1.442695, %v1626_v52 }
0x1196   :  { %v2288_v7 = vpop.eup %2287  ;;  %v1747_v11 = vpop.f32.mrb[44].mxu0 }
0x1197   :  { %v1749_v22 = vpop.f32.mrb[45].mxu0  ;;  %1642 = vrot.lane.b32.xlu1 %v2288_v7, %s2375_s8  ;;  %v1754_v38 = vadd.f32 %v1747_v11, %v1711_v57  ;;  %v1869_v57 = vld [vmem:[%s2972_s3 + $0x30] sm:$0xff] }
0x1198   :  { %v1751_v23 = vpop.f32.mrb[46].mxu0  ;;  %v1755_v47 = vadd.f32 %v1749_v22, %v1712_v17  ;;  %v1864_v17 = vld [vmem:[%s2972_s3 + $0x8] sm:$0xff] }
0x1199   :  { %v1752_v46 = vpop.f32.mrb[47].mxu0  ;;  %v2038_v27 = vmul.f32 -1.442695, %v1754_v38  ;;  %v2376_v23 = vmov 0.0|0.0  }
0x119a   :  { %2289 = vtanh.f32 %v1755_v47  ;;  %v2039_v62 = vmul.f32 -1.442695, %v1755_v47  ;;  %2073 = vmatprep.subr.bf16.mxu0 %v2376_v23  ;;  %v1866_v47 = vld [vmem:[%s2972_s3 + $0x18] sm:$0xff] }
0x119b   :  { %2291 = vpow2.f32 %v2033_v36  ;;  %v1868_v36 = vld [vmem:[%s2972_s3 + $0x28] sm:$0xff] }
0x119c   :  { %v2080_v14 = vpack.c.bf16 %v1868_v36, %v1867_v35 }
0x11a4   :  { %v2290_v33 = vpop.eup %2289 }
0x11a5   :  { %1771 = vrot.lane.b32.xlu0 %v2290_v33, %s2375_s8  ;;  %v2292_v29 = vpop.eup %2291 }
0x11a6   :  { %v1633_v31 = vadd.f32 1.0, %v2292_v29  ;;  %v1870_v29 = vld [vmem:[%s2972_s3 + $0x38] sm:$0xff] }
0x11a7   :  { %v2083_v38 = vpack.c.bf16 %v1870_v29, %v1869_v57 }
0x11a8   :  { %2293 = vrcp.f32 %v1633_v31 }
0x11a9   :  { %2295 = vpow2.f32 %v2038_v27 }
0x11b2   :  { %v2294_v18 = vpop.eup %2293 }
0x11b3   :  { %v2296_v58 = vpop.eup %2295  ;;  %v1640_v28 = vmul.f32 %v2294_v18, %v2873_v56 }
0x11b4   :  { %v1762_v3 = vadd.f32 1.0, %v2296_v58 }
0x11b6   :  { %2297 = vrcp.f32 %v1762_v3 }
0x11c0   :  { %v2298_v4 = vpop.eup %2297 }
0x11c1   :  { %v1769_v21 = vmul.f32 %v2298_v4, %v2881_v5 }
0x1209   :  { %v1643_v34 = vpop.permute.xlu1 %1642 }
0x120a   :  { %v1645_v2 = vmul.f32 %v2294_v18, %v1643_v34  ;;  %v2378_v34 = vmov 0.0  }
0x120b   :  { %2070 = vmatprep.mubr.msk.f32.mxu0 %vm2377_vm1, %v2378_v34 }
0x120c   :  { %1647 = vrot.lane.b32.xlu1 %v1645_v2, %s2375_s8 }
0x1217   :  { %v1772_v37 = vpop.permute.xlu0 %1771 }
0x1218   :  { %v1774_v13 = vmul.f32 %v2298_v4, %v1772_v37 }
0x121a   :  { %1776 = vrot.lane.b32.xlu0 %v1774_v13, %s2375_s8 }
0x127e   :  { %v1648_v30 = vpop.permute.xlu1 %1647 }
0x127f   :  { %v2916_v8 = vadd.f32 %v1648_v30, %v1640_v28  ;;  %v2043_v30 = vld [vmem:[%s2971_s2 + $0x3] ss:$0 sm:$0xff] }
0x1281   :  { %2299 = vtanh.f32 %v2916_v8 }
0x128b   :  { %v2300_v9 = vpop.eup %2299 }
0x128c   :  { %1653 = vrot.lane.b32.xlu1 %v2300_v9, %s2375_s8  ;;  %v1777_v12 = vpop.permute.xlu0 %1776 }
0x128d   :  { %v1779_v26 = vadd.f32 %v1777_v12, %v1769_v21 }
0x128f   :  { %2301 = vtanh.f32 %v1779_v26 }
0x1290   :  { %2303 = vpow2.f32 %v2034_v63 }
0x1299   :  { %v2302_v24 = vpop.eup %2301 }
0x129a   :  { %1782 = vrot.lane.b32.xlu0 %v2302_v24, %s2375_s8  ;;  %v2304_v61 = vpop.eup %2303 }
0x129b   :  { %v1634_v56 = vadd.f32 1.0, %v2304_v61 }
0x129d   :  { %2305 = vrcp.f32 %v1634_v56 }
0x129e   :  { %2307 = vpow2.f32 %v2039_v62 }
0x12a7   :  { %v2306_v60 = vpop.eup %2305 }
0x12a8   :  { %v2308_v1 = vpop.eup %2307 }
0x12a9   :  { %v1763_v48 = vadd.f32 1.0, %v2308_v1 }
0x12ab   :  { %2309 = vrcp.f32 %v1763_v48 }
0x12b5   :  { %v2310_v5 = vpop.eup %2309 }
0x12fe   :  { %v1654_v59 = vpop.permute.xlu1 %1653 }
0x12ff   :  { %v1656_v6 = vmul.f32 %v2306_v60, %v1654_v59 }
0x1301   :  { %v1657_v10 = vpack.c.bf16 %v1656_v6, %v1656_v6 }
0x1303   :  { %2035 = vmatmul.mubr.msk.bf16.vlgmr.msra.gmra.mrb[40].mxu1 %vm119_vm0, %v1657_v10 }
0x1304   :  { %1791 = vmatpush1.bf16.msra.mxu1 %v2828_v41  ;;  %1822 = vmatprep.mubr.bf16.mxu1 %v2374_v0 }
0x1305   :  { %1792 = vmatprep.subr.bf16.mxu1 %v2832_v25 }
0x1308   :  { %1793 = vmatpush1.bf16.msra.mxu1 %v2835_v42 }
0x1309   :  { %1794 = vmatprep.subr.bf16.mxu1 %v2838_v43 }
0x130c   :  { %1795 = vmatpush1.bf16.msra.mxu1 %v2841_v44  ;;  %v1783_v39 = vpop.permute.xlu0 %1782 }
0x130d   :  { %1796 = vmatprep.subr.bf16.mxu1 %v2844_v45  ;;  %v1785_v49 = vmul.f32 %v2310_v5, %v1783_v39 }
0x130f   :  { %v1786_v15 = vpack.c.bf16 %v1785_v49, %v1785_v49 }
0x1310   :  { %1797 = vmatpush1.bf16.msra.mxu1 %v2847_v32 }
0x1313   :  { %2040 = vmatmul.mubr.msk.bf16.vlgmr.msra.gmra.mrb[44].mxu1 %vm119_vm0, %v1786_v15 }
0x13d6   :  { %v1695_v0 = vpop.f32.mrb[40].mxu1 }
0x13d7   :  { %v1697_v41 = vpop.f32.mrb[41].mxu1 }
0x13d8   :  { %v1699_v25 = vpop.f32.mrb[42].mxu1 }
0x13d9   :  { %v1700_v16 = vpop.f32.mrb[43].mxu1 }
0x13e6   :  { %v1824_v40 = vpop.f32.mrb[44].mxu1 }
0x13e7   :  { %v1825_v42 = vadd.f32 %v1824_v40, %v1695_v0  ;;  %v1826_v50 = vpop.f32.mrb[45].mxu1 }
0x13e8   :  { %v1827_v43 = vadd.f32 %v1826_v50, %v1697_v41  ;;  %v1828_v19 = vpop.f32.mrb[46].mxu1 }
0x13e9   :  { %v1829_v44 = vpop.f32.mrb[47].mxu1  ;;  %v1831_v32 = vadd.f32 %v1825_v42, %v2580_v54  ;;  %v1865_v54 = vld [vmem:[%s2972_s3 + $0x10] sm:$0xff] }
0x13ea   :  { %v1832_v45 = vadd.f32 %v1827_v43, %v2572_v20  ;;  %v1863_v20 = vld [vmem:[%s2972_s3] sm:$0xff]  ;;  %v2077_v33 = vpack.c.bf16 %v1866_v47, %v1865_v54 }
0x13eb   :  { %v2041_v52 = vmul.f32 -1.442695, %v1831_v32  ;;  %v2074_v46 = vpack.c.bf16 %v1864_v17, %v1863_v20 }
0x13ec   :  { %2311 = vtanh.f32 %v1832_v45  ;;  %v2042_v2 = vmul.f32 -1.442695, %v1832_v45 }
0x13ed   :  { %2313 = vpow2.f32 %v2041_v52  ;;  %2075 = vmatpush3.bf16.msra.mxu0 %v2074_v46 }
0x13ee   :  { %2076 = vmatprep.subr.bf16.mxu0 %v2376_v23 }
0x13f1   :  { %2078 = vmatpush3.bf16.msra.mxu0 %v2077_v33 }
0x13f2   :  { %2079 = vmatprep.subr.bf16.mxu0 %v2376_v23 }
0x13f5   :  { %2081 = vmatpush3.bf16.msra.mxu0 %v2080_v14 }
0x13f6   :  { %v2312_v51 = vpop.eup %2311  ;;  %2082 = vmatprep.subr.bf16.mxu0 %v2376_v23 }
0x13f7   :  { %1848 = vrot.lane.b32.xlu1 %v2312_v51, %s2375_s8  ;;  %v2314_v53 = vpop.eup %2313 }
0x13f8   :  { %v1839_v55 = vadd.f32 1.0, %v2314_v53 }
0x13f9   :  { %2084 = vmatpush3.bf16.msra.mxu0 %v2083_v38 }
0x13fa   :  { %2315 = vrcp.f32 %v1839_v55 }
0x1404   :  { %v2316_v7 = vpop.eup %2315 }
0x1405   :  { %v1846_v31 = vmul.f32 %v2316_v7, %v2916_v8 }
0x1469   :  { %v1849_v11 = vpop.permute.xlu1 %1848 }
0x146a   :  { %v1851_v22 = vmul.f32 %v2316_v7, %v1849_v11 }
0x146c   :  { %1853 = vrot.lane.b32.xlu0 %v1851_v22, %s2375_s8 }
0x14de   :  { %v1854_v27 = vpop.permute.xlu0 %1853 }
0x14df   :  { %v1856_v18 = vadd.f32 %v1854_v27, %v1846_v31 }
0x14e1   :  { %2317 = vtanh.f32 %v1856_v18 }
0x14e2   :  { %2319 = vpow2.f32 %v2042_v2 }
0x14eb   :  { %v2318_v58 = vpop.eup %2317 }
0x14ec   :  { %1859 = vrot.lane.b32.xlu1 %v2318_v58, %s2375_s8  ;;  %v2320_v3 = vpop.eup %2319 }
0x14ed   :  { %v1840_v4 = vadd.f32 1.0, %v2320_v3 }
0x14ef   :  { %2321 = vrcp.f32 %v1840_v4 }
0x14f9   :  { %v2322_v37 = vpop.eup %2321 }
0x155e   :  { %v1860_v13 = vpop.permute.xlu1 %1859 }
0x155f   :  { %v1862_v28 = vmul.f32 %v2322_v37, %v1860_v13 }
0x1561   :  { %2071 = vmatmul.mubr.msk.f32.vlgmr.msra.gmra.mrb[48].mxu0 %vm119_vm0, %v1862_v28 }
0x1634   :  { %v1945_v8 = vpop.f32.mrb[48].mxu0 }
0x1635   :  { %v1946_v9 = vadd.f32 %v2043_v30, %v1945_v8  ;;  %v2072_v21 = vpop.f32.mrb[49].mxu0 }
0x1637   :  { %1950 = vst.msk [vmem:[%s2973_s4] sm:$0x3] %vm1949_vm2, %v1946_v9 }
0x1638   :  { %1955 = vsyncpa [#allocation3], 1 }

</bundles_post_ra>
